<compile_context>
chip_gen: v5e
topology: v5e:2x2
jax: 0.10.0
libtpu: 0.0.40
codegen_flags: <defaults>
</compile_context>

<pallas_src>
import math
import functools

import jax
import jax.numpy as jnp
from jax.experimental import pallas as pl
from jax.experimental.pallas import tpu as pltpu


def _layernorm(v, g, b, eps=1e-5):
    # v: (N, D) f32, g/b: (1, D)
    mu = jnp.mean(v, axis=-1, keepdims=True)
    var = jnp.mean((v - mu) ** 2, axis=-1, keepdims=True)
    return (v - mu) * jax.lax.rsqrt(var + eps) * g + b


def _make_block_kernel(n_head):
    def kernel(q_ref, x_ref,
               ln1q_g_ref, ln1q_b_ref, ln1_g_ref, ln1_b_ref,
               wq_ref, bq_ref, wkv_ref, bkv_ref,
               wo_ref, bo_ref,
               ln2_g_ref, ln2_b_ref,
               wfc_ref, bfc_ref, wproj_ref, bproj_ref,
               o_ref):
        Bb, T, D = q_ref.shape
        S = x_ref.shape[1]
        H = n_head
        hd = D // H
        cdt = wq_ref.dtype          # MXU operand dtype (f32 or bf16)

        # Residual stream / context, stacked to tall (rows, D) matrices so the
        # matmuls get good MXU M-occupancy instead of T(=4)-row passes.
        q_res = q_ref[...].astype(jnp.float32).reshape(Bb * T, D)
        x_in = x_ref[...].astype(jnp.float32).reshape(Bb * S, D)

        # --- pre-attention layer norms (f32 math) ---
        qn = _layernorm(q_res, ln1q_g_ref[...], ln1q_b_ref[...]).astype(cdt)
        xn = _layernorm(x_in, ln1_g_ref[...], ln1_b_ref[...]).astype(cdt)

        # --- projections ---
        # 1/sqrt(hd) is already folded into wq/bq; K and V share one fused
        # (D, 2D) matmul to better fill the MXU N dim and halve push/pop count.
        Q = jnp.dot(qn, wq_ref[...], preferred_element_type=jnp.float32) + bq_ref[...]
        KV = jnp.dot(xn, wkv_ref[...], preferred_element_type=jnp.float32) + bkv_ref[...]
        K = KV[:, :D]
        V = KV[:, D:]

        # --- all heads as one batched matmul (batch dim = Bb*H) ---
        Qh = Q.reshape(Bb, T, H, hd).transpose(0, 2, 1, 3).reshape(Bb * H, T, hd).astype(cdt)
        Kh = K.reshape(Bb, S, H, hd).transpose(0, 2, 1, 3).reshape(Bb * H, S, hd).astype(cdt)
        Vh = V.reshape(Bb, S, H, hd).transpose(0, 2, 1, 3).reshape(Bb * H, S, hd).astype(cdt)

        s = jnp.einsum('nqd,nkd->nqk', Qh, Kh,
                       preferred_element_type=jnp.float32)          # (Bb*H, T, S)
        s = s - jnp.max(s, axis=-1, keepdims=True)
        p = jnp.exp(s)
        p = p * pl.reciprocal(jnp.sum(p, axis=-1, keepdims=True), approx=True)
        ctx = jnp.einsum('nqk,nkd->nqd', p.astype(cdt), Vh,
                         preferred_element_type=jnp.float32)         # (Bb*H, T, hd)
        ctx = ctx.reshape(Bb, H, T, hd).transpose(0, 2, 1, 3).reshape(Bb * T, D)

        # --- output projection + residual ---
        attn_out = jnp.dot(ctx.astype(cdt), wo_ref[...],
                           preferred_element_type=jnp.float32) + bo_ref[...]
        qr = q_res + attn_out

        # --- MLP with QuickGELU + residual ---
        # TODO(synk): for very large D on v7x, chunk the 4D hidden dim and
        # accumulate the wproj contribution per chunk instead of materializing
        # the full (Bb*T, 4D) f32 intermediate.
        qn2 = _layernorm(qr, ln2_g_ref[...], ln2_b_ref[...]).astype(cdt)
        h1 = jnp.dot(qn2, wfc_ref[...], preferred_element_type=jnp.float32) + bfc_ref[...]
        h1 = h1 * jax.nn.sigmoid(1.702 * h1)                         # QuickGELU (f32)
        qr = qr + jnp.dot(h1.astype(cdt), wproj_ref[...],
                          preferred_element_type=jnp.float32) + bproj_ref[...]

        o_ref[...] = qr.reshape(Bb, T, D).astype(o_ref.dtype)

    return kernel


_WEIGHT_ORDER = [
    "ln1q_g", "ln1q_b", "ln1_g", "ln1_b",
    "wq", "bq", "wkv", "bkv",
    "wo", "bo",
    "ln2_g", "ln2_b",
    "wfc", "bfc", "wproj", "bproj",
]


def _pick_b_blk(B, T, rows_target=256):
    """Batch-block size: pack ~rows_target rows (B_blk*T) per grid step for MXU
    M-occupancy while keeping >=2 grid steps when B > 1 (megacore / v7x)."""
    cap = max(1, rows_target // max(T, 1))
    best = 1
    for d in range(1, B + 1):
        if B % d == 0 and d <= cap:
            best = d
    if best == B and B > 1:          # keep at least 2 grid steps
        for d in range(B - 1, 0, -1):
            if B % d == 0:
                best = d
                break
    return best


def sat_block(q, x, params, n_head, b_blk):
    """One SpatialAggregationResidualAttentionBlock for batch-first q, x."""
    B, T, D = q.shape
    S = x.shape[1]
    weights = [params[name] for name in _WEIGHT_ORDER]

    def full_spec(w):
        nd = w.ndim
        # Constant index map: the weight block never changes across the grid,
        # so Pallas keeps it resident (no re-DMA per step).
        return pl.BlockSpec(w.shape, lambda b, _nd=nd: (0,) * _nd)

    in_specs = [
        pl.BlockSpec((b_blk, T, D), lambda b: (b, 0, 0)),
        pl.BlockSpec((b_blk, S, D), lambda b: (b, 0, 0)),
    ] + [full_spec(w) for w in weights]

    return pl.pallas_call(
        _make_block_kernel(n_head),
        out_shape=jax.ShapeDtypeStruct((B, T, D), q.dtype),
        grid_spec=pltpu.PrefetchScalarGridSpec(
            num_scalar_prefetch=0,
            grid=(B // b_blk,),
            in_specs=in_specs,
            out_specs=pl.BlockSpec((b_blk, T, D), lambda b: (b, 0, 0)),
        ),
        compiler_params=pltpu.CompilerParams(
            dimension_semantics=("parallel",),
            # Default scoped VMEM (16/32 MiB) is far below physical; 64 MiB is
            # safe on v5e/v6e/v7x and lets weights + a generous batch block
            # stay resident.
            vmem_limit_bytes=64 * 1024 * 1024,
        ),
    )(q, x, *weights)


def init_params(key, width, layers, heads, num_spatial_tokens,
                param_dtype=jnp.float32):
    """Deterministic synthetic params (shapes match the PyTorch module).

    Matmul weights are pre-transposed (x @ W layout), the attention scale is
    folded into wq/bq, and Wk/Wv are fused into a single (D, 2D) weight.
    param_dtype controls the MXU operand dtype (use jnp.bfloat16 for 2x MXU
    throughput / half the weight VMEM); LN params and biases stay f32.
    """
    D = width
    hd = D // heads
    attn_scale = hd ** (-0.5)
    tok_scale = D ** (-0.5)
    keys = jax.random.split(key, 1 + layers)

    tokens = tok_scale * jax.random.normal(keys[0], (num_spatial_tokens, D), jnp.float32)

    layer_params = []
    for l in range(layers):
        lk = jax.random.split(keys[1 + l], 8)
        # nn.MultiheadAttention: in_proj_weight (3D, D) split into Wq/Wk/Wv.
        in_proj_w = 0.02 * jax.random.normal(lk[0], (3 * D, D), jnp.float32)
        in_proj_b = 0.02 * jax.random.normal(lk[1], (3 * D,), jnp.float32)
        out_w = 0.02 * jax.random.normal(lk[2], (D, D), jnp.float32)
        out_b = 0.02 * jax.random.normal(lk[3], (D,), jnp.float32)
        fc_w = 0.02 * jax.random.normal(lk[4], (4 * D, D), jnp.float32)
        fc_b = 0.02 * jax.random.normal(lk[5], (4 * D,), jnp.float32)
        proj_w = 0.02 * jax.random.normal(lk[6], (D, 4 * D), jnp.float32)
        proj_b = 0.02 * jax.random.normal(lk[7], (D,), jnp.float32)

        # PyTorch computes x @ W^T and then scales q; store W^T with the
        # 1/sqrt(hd) scale folded into wq/bq, and fuse Wk/Wv column-wise.
        wq = in_proj_w[0 * D:1 * D].T * attn_scale                     # (D, D)
        bq = in_proj_b[0 * D:1 * D] * attn_scale
        wkv = jnp.concatenate([in_proj_w[1 * D:2 * D].T,
                               in_proj_w[2 * D:3 * D].T], axis=1)      # (D, 2D)
        bkv = jnp.concatenate([in_proj_b[1 * D:2 * D],
                               in_proj_b[2 * D:3 * D]])                # (2D,)

        p = {
            # LayerNorm params (ones/zeros like nn.LayerNorm default), f32.
            "ln1q_g": jnp.ones((1, D), jnp.float32),
            "ln1q_b": jnp.zeros((1, D), jnp.float32),
            "ln1_g": jnp.ones((1, D), jnp.float32),
            "ln1_b": jnp.zeros((1, D), jnp.float32),
            "ln2_g": jnp.ones((1, D), jnp.float32),
            "ln2_b": jnp.zeros((1, D), jnp.float32),
            # Attention projections (MXU operand dtype).
            "wq": wq.astype(param_dtype),
            "bq": bq.reshape(1, D),                   # biases stay f32
            "wkv": wkv.astype(param_dtype),
            "bkv": bkv.reshape(1, 2 * D),
            "wo": out_w.T.astype(param_dtype),        # (D, D)
            "bo": out_b.reshape(1, D),
            # MLP
            "wfc": fc_w.T.astype(param_dtype),        # (D, 4D)
            "bfc": fc_b.reshape(1, 4 * D),
            "wproj": proj_w.T.astype(param_dtype),    # (4D, D)
            "bproj": proj_b.reshape(1, D),
        }
        layer_params.append(p)

    return tokens, layer_params


def spatial_aggregation_transformer(x, tokens, layer_params, heads, b_blk=None):
    """x: (B, S, D) -> (B, T, D).  Equivalent to the PyTorch forward (which
    permutes to seq-first only for nn.MultiheadAttention)."""
    B, S, D = x.shape
    T = tokens.shape[0]
    if b_blk is None:
        b_blk = _pick_b_blk(B, T)
    q = jnp.broadcast_to(tokens[None].astype(x.dtype), (B, T, D))
    for p in layer_params:
        q = sat_block(q, x, p, heads, b_blk)
    return q


if __name__ == "__main__":
    B, S = 2, 8
    width, layers, heads, num_spatial_tokens = 32, 2, 4, 4

    key = jax.random.PRNGKey(0)
    kx, kp = jax.random.split(key)
    x = jax.random.normal(kx, (B, S, width), jnp.float32)

    # f32 params keep the PyTorch-f32 forward semantics; pass
    # param_dtype=jnp.bfloat16 for the bf16 MXU operand path.
    tokens, layer_params = init_params(kp, width, layers, heads, num_spatial_tokens)

    fn = jax.jit(functools.partial(spatial_aggregation_transformer, heads=heads))
    out = fn(x, tokens, layer_params)
    out = jax.block_until_ready(out)

    assert out.shape == (B, num_spatial_tokens, width)
    assert bool(jnp.all(jnp.isfinite(out)))
    print("KERNEL_OK")
</pallas_src>

<mosaic_0001>
module attributes {stable_mosaic.version = 11 : i64} {
  func.func @kernel(%arg0: i32, %arg1: memref<1x4x32xf32, #tpu.memory_space<vmem>>, %arg2: memref<1x8x32xf32, #tpu.memory_space<vmem>>, %arg3: memref<1x32xf32, #tpu.memory_space<vmem>>, %arg4: memref<1x32xf32, #tpu.memory_space<vmem>>, %arg5: memref<1x32xf32, #tpu.memory_space<vmem>>, %arg6: memref<1x32xf32, #tpu.memory_space<vmem>>, %arg7: memref<32x32xf32, #tpu.memory_space<vmem>>, %arg8: memref<1x32xf32, #tpu.memory_space<vmem>>, %arg9: memref<32x64xf32, #tpu.memory_space<vmem>>, %arg10: memref<1x64xf32, #tpu.memory_space<vmem>>, %arg11: memref<32x32xf32, #tpu.memory_space<vmem>>, %arg12: memref<1x32xf32, #tpu.memory_space<vmem>>, %arg13: memref<1x32xf32, #tpu.memory_space<vmem>>, %arg14: memref<1x32xf32, #tpu.memory_space<vmem>>, %arg15: memref<32x128xf32, #tpu.memory_space<vmem>>, %arg16: memref<1x128xf32, #tpu.memory_space<vmem>>, %arg17: memref<128x32xf32, #tpu.memory_space<vmem>>, %arg18: memref<1x32xf32, #tpu.memory_space<vmem>>, %arg19: memref<1x4x32xf32, #tpu.memory_space<vmem>>) attributes {dimension_semantics = [#tpu.dimension_semantics<parallel>], iteration_bounds = array<i64: 2>, scalar_prefetch = 0 : i64, scratch_operands = 0 : i64, tpu.core_type = #tpu.core_type<tc>, window_params = [{transform_indices = @transform_0, window_bounds = array<i64: 1, 4, 32>}, {transform_indices = @transform_1, window_bounds = array<i64: 1, 8, 32>}, {pipeline_mode = #tpu.pipeline_mode<synchronous>, transform_indices = @transform_2, window_bounds = array<i64: 1, 32>}, {pipeline_mode = #tpu.pipeline_mode<synchronous>, transform_indices = @transform_3, window_bounds = array<i64: 1, 32>}, {pipeline_mode = #tpu.pipeline_mode<synchronous>, transform_indices = @transform_4, window_bounds = array<i64: 1, 32>}, {pipeline_mode = #tpu.pipeline_mode<synchronous>, transform_indices = @transform_5, window_bounds = array<i64: 1, 32>}, {pipeline_mode = #tpu.pipeline_mode<synchronous>, transform_indices = @transform_6, window_bounds = array<i64: 32, 32>}, {pipeline_mode = #tpu.pipeline_mode<synchronous>, transform_indices = @transform_7, window_bounds = array<i64: 1, 32>}, {pipeline_mode = #tpu.pipeline_mode<synchronous>, transform_indices = @transform_8, window_bounds = array<i64: 32, 64>}, {pipeline_mode = #tpu.pipeline_mode<synchronous>, transform_indices = @transform_9, window_bounds = array<i64: 1, 64>}, {pipeline_mode = #tpu.pipeline_mode<synchronous>, transform_indices = @transform_10, window_bounds = array<i64: 32, 32>}, {pipeline_mode = #tpu.pipeline_mode<synchronous>, transform_indices = @transform_11, window_bounds = array<i64: 1, 32>}, {pipeline_mode = #tpu.pipeline_mode<synchronous>, transform_indices = @transform_12, window_bounds = array<i64: 1, 32>}, {pipeline_mode = #tpu.pipeline_mode<synchronous>, transform_indices = @transform_13, window_bounds = array<i64: 1, 32>}, {pipeline_mode = #tpu.pipeline_mode<synchronous>, transform_indices = @transform_14, window_bounds = array<i64: 32, 128>}, {pipeline_mode = #tpu.pipeline_mode<synchronous>, transform_indices = @transform_15, window_bounds = array<i64: 1, 128>}, {pipeline_mode = #tpu.pipeline_mode<synchronous>, transform_indices = @transform_16, window_bounds = array<i64: 128, 32>}, {pipeline_mode = #tpu.pipeline_mode<synchronous>, transform_indices = @transform_17, window_bounds = array<i64: 1, 32>}, {transform_indices = @transform_18, window_bounds = array<i64: 1, 4, 32>}]} {
    %c0 = arith.constant 0 : index
    %c0_0 = arith.constant 0 : index
    %c0_1 = arith.constant 0 : index
    %0 = vector.load %arg1[%c0, %c0_0, %c0_1] : memref<1x4x32xf32, #tpu.memory_space<vmem>>, vector<1x4x32xf32>
    %1 = vector.shape_cast %0 : vector<1x4x32xf32> to vector<4x32xf32>
    %c0_2 = arith.constant 0 : index
    %c0_3 = arith.constant 0 : index
    %c0_4 = arith.constant 0 : index
    %2 = vector.load %arg2[%c0_2, %c0_3, %c0_4] : memref<1x8x32xf32, #tpu.memory_space<vmem>>, vector<1x8x32xf32>
    %3 = vector.shape_cast %2 : vector<1x8x32xf32> to vector<8x32xf32>
    %c0_5 = arith.constant 0 : index
    %c0_6 = arith.constant 0 : index
    %4 = vector.load %arg3[%c0_5, %c0_6] : memref<1x32xf32, #tpu.memory_space<vmem>>, vector<1x32xf32>
    %c0_7 = arith.constant 0 : index
    %c0_8 = arith.constant 0 : index
    %5 = vector.load %arg4[%c0_7, %c0_8] : memref<1x32xf32, #tpu.memory_space<vmem>>, vector<1x32xf32>
    %cst = arith.constant dense<0.000000e+00> : vector<4xf32>
    %6 = vector.multi_reduction <add>, %1, %cst [1] : vector<4x32xf32> to vector<4xf32>
    %7 = vector.shape_cast %6 : vector<4xf32> to vector<4x1xf32>
    %cst_9 = arith.constant 3.200000e+01 : f32
    %8 = vector.broadcast %cst_9 : f32 to vector<4x1xf32>
    %9 = arith.divf %7, %8 : vector<4x1xf32>
    %10 = vector.broadcast %9 : vector<4x1xf32> to vector<4x32xf32>
    %11 = arith.subf %1, %10 : vector<4x32xf32>
    %12 = arith.mulf %11, %11 : vector<4x32xf32>
    %cst_10 = arith.constant dense<0.000000e+00> : vector<4xf32>
    %13 = vector.multi_reduction <add>, %12, %cst_10 [1] : vector<4x32xf32> to vector<4xf32>
    %14 = vector.shape_cast %13 : vector<4xf32> to vector<4x1xf32>
    %cst_11 = arith.constant 3.200000e+01 : f32
    %15 = vector.broadcast %cst_11 : f32 to vector<4x1xf32>
    %16 = arith.divf %14, %15 : vector<4x1xf32>
    %17 = vector.broadcast %9 : vector<4x1xf32> to vector<4x32xf32>
    %18 = arith.subf %1, %17 : vector<4x32xf32>
    %cst_12 = arith.constant 9.99999974E-6 : f32
    %19 = vector.broadcast %cst_12 : f32 to vector<4x1xf32>
    %20 = arith.addf %16, %19 : vector<4x1xf32>
    %21 = math.rsqrt %20 : vector<4x1xf32>
    %22 = vector.broadcast %21 : vector<4x1xf32> to vector<4x32xf32>
    %23 = arith.mulf %18, %22 : vector<4x32xf32>
    %24 = vector.broadcast %4 : vector<1x32xf32> to vector<4x32xf32>
    %25 = arith.mulf %23, %24 : vector<4x32xf32>
    %26 = vector.broadcast %5 : vector<1x32xf32> to vector<4x32xf32>
    %27 = arith.addf %25, %26 : vector<4x32xf32>
    %c0_13 = arith.constant 0 : index
    %c0_14 = arith.constant 0 : index
    %28 = vector.load %arg5[%c0_13, %c0_14] : memref<1x32xf32, #tpu.memory_space<vmem>>, vector<1x32xf32>
    %c0_15 = arith.constant 0 : index
    %c0_16 = arith.constant 0 : index
    %29 = vector.load %arg6[%c0_15, %c0_16] : memref<1x32xf32, #tpu.memory_space<vmem>>, vector<1x32xf32>
    %cst_17 = arith.constant dense<0.000000e+00> : vector<8xf32>
    %30 = vector.multi_reduction <add>, %3, %cst_17 [1] : vector<8x32xf32> to vector<8xf32>
    %31 = vector.shape_cast %30 : vector<8xf32> to vector<8x1xf32>
    %cst_18 = arith.constant 3.200000e+01 : f32
    %32 = vector.broadcast %cst_18 : f32 to vector<8x1xf32>
    %33 = arith.divf %31, %32 : vector<8x1xf32>
    %34 = vector.broadcast %33 : vector<8x1xf32> to vector<8x32xf32>
    %35 = arith.subf %3, %34 : vector<8x32xf32>
    %36 = arith.mulf %35, %35 : vector<8x32xf32>
    %cst_19 = arith.constant dense<0.000000e+00> : vector<8xf32>
    %37 = vector.multi_reduction <add>, %36, %cst_19 [1] : vector<8x32xf32> to vector<8xf32>
    %38 = vector.shape_cast %37 : vector<8xf32> to vector<8x1xf32>
    %cst_20 = arith.constant 3.200000e+01 : f32
    %39 = vector.broadcast %cst_20 : f32 to vector<8x1xf32>
    %40 = arith.divf %38, %39 : vector<8x1xf32>
    %41 = vector.broadcast %33 : vector<8x1xf32> to vector<8x32xf32>
    %42 = arith.subf %3, %41 : vector<8x32xf32>
    %cst_21 = arith.constant 9.99999974E-6 : f32
    %43 = vector.broadcast %cst_21 : f32 to vector<8x1xf32>
    %44 = arith.addf %40, %43 : vector<8x1xf32>
    %45 = math.rsqrt %44 : vector<8x1xf32>
    %46 = vector.broadcast %45 : vector<8x1xf32> to vector<8x32xf32>
    %47 = arith.mulf %42, %46 : vector<8x32xf32>
    %48 = vector.broadcast %28 : vector<1x32xf32> to vector<8x32xf32>
    %49 = arith.mulf %47, %48 : vector<8x32xf32>
    %50 = vector.broadcast %29 : vector<1x32xf32> to vector<8x32xf32>
    %51 = arith.addf %49, %50 : vector<8x32xf32>
    %c0_22 = arith.constant 0 : index
    %c0_23 = arith.constant 0 : index
    %52 = vector.load %arg7[%c0_22, %c0_23] : memref<32x32xf32, #tpu.memory_space<vmem>>, vector<32x32xf32>
    %cst_24 = arith.constant dense<0.000000e+00> : vector<4x32xf32>
    %53 = tpu.matmul %27, %52, %cst_24 {dimension_numbers = #tpu.dot_dimension_numbers<[1], [0], [0], [1], [0, 0, 1, 1], [], []>} : vector<4x32xf32>, vector<32x32xf32>, vector<4x32xf32> -> vector<4x32xf32>
    %c0_25 = arith.constant 0 : index
    %c0_26 = arith.constant 0 : index
    %54 = vector.load %arg8[%c0_25, %c0_26] : memref<1x32xf32, #tpu.memory_space<vmem>>, vector<1x32xf32>
    %55 = vector.broadcast %54 : vector<1x32xf32> to vector<4x32xf32>
    %56 = arith.addf %53, %55 : vector<4x32xf32>
    %c0_27 = arith.constant 0 : index
    %c0_28 = arith.constant 0 : index
    %57 = vector.load %arg9[%c0_27, %c0_28] : memref<32x64xf32, #tpu.memory_space<vmem>>, vector<32x64xf32>
    %cst_29 = arith.constant dense<0.000000e+00> : vector<8x64xf32>
    %58 = tpu.matmul %51, %57, %cst_29 {dimension_numbers = #tpu.dot_dimension_numbers<[1], [0], [0], [1], [0, 0, 1, 1], [], []>} : vector<8x32xf32>, vector<32x64xf32>, vector<8x64xf32> -> vector<8x64xf32>
    %c0_30 = arith.constant 0 : index
    %c0_31 = arith.constant 0 : index
    %59 = vector.load %arg10[%c0_30, %c0_31] : memref<1x64xf32, #tpu.memory_space<vmem>>, vector<1x64xf32>
    %60 = vector.broadcast %59 : vector<1x64xf32> to vector<8x64xf32>
    %61 = arith.addf %58, %60 : vector<8x64xf32>
    %62 = vector.extract_strided_slice %61 {offsets = [0, 0], sizes = [8, 32], strides = [1, 1]} : vector<8x64xf32> to vector<8x32xf32>
    %63 = vector.extract_strided_slice %61 {offsets = [0, 32], sizes = [8, 32], strides = [1, 1]} : vector<8x64xf32> to vector<8x32xf32>
    %64 = vector.shape_cast %56 : vector<4x32xf32> to vector<1x4x4x8xf32>
    %65 = tpu.transpose %64, [0, 2, 1, 3] : vector<1x4x4x8xf32> -> vector<1x4x4x8xf32>
    %66 = vector.shape_cast %65 : vector<1x4x4x8xf32> to vector<4x4x8xf32>
    %67 = vector.shape_cast %62 : vector<8x32xf32> to vector<1x8x4x8xf32>
    %68 = tpu.transpose %67, [0, 2, 1, 3] : vector<1x8x4x8xf32> -> vector<1x4x8x8xf32>
    %69 = vector.shape_cast %68 : vector<1x4x8x8xf32> to vector<4x8x8xf32>
    %70 = vector.shape_cast %63 : vector<8x32xf32> to vector<1x8x4x8xf32>
    %71 = tpu.transpose %70, [0, 2, 1, 3] : vector<1x8x4x8xf32> -> vector<1x4x8x8xf32>
    %72 = vector.shape_cast %71 : vector<1x4x8x8xf32> to vector<4x8x8xf32>
    "tpu.trace_start"() <{level = 10 : i32, message = "nqd,nkd->nqk"}> : () -> ()
    %cst_32 = arith.constant dense<0.000000e+00> : vector<4x4x8xf32>
    %73 = tpu.matmul %66, %69, %cst_32 {dimension_numbers = #tpu.dot_dimension_numbers<[2], [2], [1], [1], [0, 0, 0, 1, 1, 1], [0], [0]>} : vector<4x4x8xf32>, vector<4x8x8xf32>, vector<4x4x8xf32> -> vector<4x4x8xf32>
    "tpu.trace_stop"() : () -> ()
    %cst_33 = arith.constant dense<0xFF800000> : vector<4x4xf32>
    %74 = vector.multi_reduction <maximumf>, %73, %cst_33 [2] : vector<4x4x8xf32> to vector<4x4xf32>
    %75 = vector.shape_cast %74 : vector<4x4xf32> to vector<4x4x1xf32>
    %76 = vector.broadcast %75 : vector<4x4x1xf32> to vector<4x4x8xf32>
    %77 = arith.subf %73, %76 : vector<4x4x8xf32>
    %78 = math.exp %77 : vector<4x4x8xf32>
    %cst_34 = arith.constant dense<0.000000e+00> : vector<4x4xf32>
    %79 = vector.multi_reduction <add>, %78, %cst_34 [2] : vector<4x4x8xf32> to vector<4x4xf32>
    %80 = vector.shape_cast %79 : vector<4x4xf32> to vector<4x4x1xf32>
    %81 = tpu.reciprocal %80 {approx = true} : vector<4x4x1xf32> -> vector<4x4x1xf32>
    %82 = vector.broadcast %81 : vector<4x4x1xf32> to vector<4x4x8xf32>
    %83 = arith.mulf %78, %82 : vector<4x4x8xf32>
    "tpu.trace_start"() <{level = 10 : i32, message = "nqk,nkd->nqd"}> : () -> ()
    %cst_35 = arith.constant dense<0.000000e+00> : vector<4x4x8xf32>
    %84 = tpu.matmul %83, %72, %cst_35 {dimension_numbers = #tpu.dot_dimension_numbers<[2], [1], [1], [2], [0, 0, 0, 1, 1, 2], [0], [0]>} : vector<4x4x8xf32>, vector<4x8x8xf32>, vector<4x4x8xf32> -> vector<4x4x8xf32>
    "tpu.trace_stop"() : () -> ()
    %85 = vector.shape_cast %84 : vector<4x4x8xf32> to vector<1x4x4x8xf32>
    %86 = tpu.transpose %85, [0, 2, 1, 3] : vector<1x4x4x8xf32> -> vector<1x4x4x8xf32>
    %87 = vector.shape_cast %86 : vector<1x4x4x8xf32> to vector<4x32xf32>
    %c0_36 = arith.constant 0 : index
    %c0_37 = arith.constant 0 : index
    %88 = vector.load %arg11[%c0_36, %c0_37] : memref<32x32xf32, #tpu.memory_space<vmem>>, vector<32x32xf32>
    %cst_38 = arith.constant dense<0.000000e+00> : vector<4x32xf32>
    %89 = tpu.matmul %87, %88, %cst_38 {dimension_numbers = #tpu.dot_dimension_numbers<[1], [0], [0], [1], [0, 0, 1, 1], [], []>} : vector<4x32xf32>, vector<32x32xf32>, vector<4x32xf32> -> vector<4x32xf32>
    %c0_39 = arith.constant 0 : index
    %c0_40 = arith.constant 0 : index
    %90 = vector.load %arg12[%c0_39, %c0_40] : memref<1x32xf32, #tpu.memory_space<vmem>>, vector<1x32xf32>
    %91 = vector.broadcast %90 : vector<1x32xf32> to vector<4x32xf32>
    %92 = arith.addf %89, %91 : vector<4x32xf32>
    %93 = arith.addf %1, %92 : vector<4x32xf32>
    %c0_41 = arith.constant 0 : index
    %c0_42 = arith.constant 0 : index
    %94 = vector.load %arg13[%c0_41, %c0_42] : memref<1x32xf32, #tpu.memory_space<vmem>>, vector<1x32xf32>
    %c0_43 = arith.constant 0 : index
    %c0_44 = arith.constant 0 : index
    %95 = vector.load %arg14[%c0_43, %c0_44] : memref<1x32xf32, #tpu.memory_space<vmem>>, vector<1x32xf32>
    %cst_45 = arith.constant dense<0.000000e+00> : vector<4xf32>
    %96 = vector.multi_reduction <add>, %93, %cst_45 [1] : vector<4x32xf32> to vector<4xf32>
    %97 = vector.shape_cast %96 : vector<4xf32> to vector<4x1xf32>
    %cst_46 = arith.constant 3.200000e+01 : f32
    %98 = vector.broadcast %cst_46 : f32 to vector<4x1xf32>
    %99 = arith.divf %97, %98 : vector<4x1xf32>
    %100 = vector.broadcast %99 : vector<4x1xf32> to vector<4x32xf32>
    %101 = arith.subf %93, %100 : vector<4x32xf32>
    %102 = arith.mulf %101, %101 : vector<4x32xf32>
    %cst_47 = arith.constant dense<0.000000e+00> : vector<4xf32>
    %103 = vector.multi_reduction <add>, %102, %cst_47 [1] : vector<4x32xf32> to vector<4xf32>
    %104 = vector.shape_cast %103 : vector<4xf32> to vector<4x1xf32>
    %cst_48 = arith.constant 3.200000e+01 : f32
    %105 = vector.broadcast %cst_48 : f32 to vector<4x1xf32>
    %106 = arith.divf %104, %105 : vector<4x1xf32>
    %107 = vector.broadcast %99 : vector<4x1xf32> to vector<4x32xf32>
    %108 = arith.subf %93, %107 : vector<4x32xf32>
    %cst_49 = arith.constant 9.99999974E-6 : f32
    %109 = vector.broadcast %cst_49 : f32 to vector<4x1xf32>
    %110 = arith.addf %106, %109 : vector<4x1xf32>
    %111 = math.rsqrt %110 : vector<4x1xf32>
    %112 = vector.broadcast %111 : vector<4x1xf32> to vector<4x32xf32>
    %113 = arith.mulf %108, %112 : vector<4x32xf32>
    %114 = vector.broadcast %94 : vector<1x32xf32> to vector<4x32xf32>
    %115 = arith.mulf %113, %114 : vector<4x32xf32>
    %116 = vector.broadcast %95 : vector<1x32xf32> to vector<4x32xf32>
    %117 = arith.addf %115, %116 : vector<4x32xf32>
    %c0_50 = arith.constant 0 : index
    %c0_51 = arith.constant 0 : index
    %118 = vector.load %arg15[%c0_50, %c0_51] : memref<32x128xf32, #tpu.memory_space<vmem>>, vector<32x128xf32>
    %cst_52 = arith.constant dense<0.000000e+00> : vector<4x128xf32>
    %119 = tpu.matmul %117, %118, %cst_52 {dimension_numbers = #tpu.dot_dimension_numbers<[1], [0], [0], [1], [0, 0, 1, 1], [], []>} : vector<4x32xf32>, vector<32x128xf32>, vector<4x128xf32> -> vector<4x128xf32>
    %c0_53 = arith.constant 0 : index
    %c0_54 = arith.constant 0 : index
    %120 = vector.load %arg16[%c0_53, %c0_54] : memref<1x128xf32, #tpu.memory_space<vmem>>, vector<1x128xf32>
    %121 = vector.broadcast %120 : vector<1x128xf32> to vector<4x128xf32>
    %122 = arith.addf %119, %121 : vector<4x128xf32>
    %cst_55 = arith.constant 1.702000e+00 : f32
    %123 = vector.broadcast %cst_55 : f32 to vector<4x128xf32>
    %124 = arith.mulf %123, %122 : vector<4x128xf32>
    %125 = arith.negf %124 : vector<4x128xf32>
    %126 = math.exp %125 : vector<4x128xf32>
    %cst_56 = arith.constant 1.000000e+00 : f32
    %127 = vector.broadcast %cst_56 : f32 to vector<4x128xf32>
    %128 = arith.addf %127, %126 : vector<4x128xf32>
    %129 = arith.divf %127, %128 : vector<4x128xf32>
    %130 = arith.mulf %122, %129 : vector<4x128xf32>
    %c0_57 = arith.constant 0 : index
    %c0_58 = arith.constant 0 : index
    %131 = vector.load %arg17[%c0_57, %c0_58] : memref<128x32xf32, #tpu.memory_space<vmem>>, vector<128x32xf32>
    %cst_59 = arith.constant dense<0.000000e+00> : vector<4x32xf32>
    %132 = tpu.matmul %130, %131, %cst_59 {dimension_numbers = #tpu.dot_dimension_numbers<[1], [0], [0], [1], [0, 0, 1, 1], [], []>} : vector<4x128xf32>, vector<128x32xf32>, vector<4x32xf32> -> vector<4x32xf32>
    %133 = arith.addf %93, %132 : vector<4x32xf32>
    %c0_60 = arith.constant 0 : index
    %c0_61 = arith.constant 0 : index
    %134 = vector.load %arg18[%c0_60, %c0_61] : memref<1x32xf32, #tpu.memory_space<vmem>>, vector<1x32xf32>
    %135 = vector.broadcast %134 : vector<1x32xf32> to vector<4x32xf32>
    %136 = arith.addf %133, %135 : vector<4x32xf32>
    %137 = vector.shape_cast %136 : vector<4x32xf32> to vector<1x4x32xf32>
    %c0_62 = arith.constant 0 : index
    %c0_63 = arith.constant 0 : index
    %c0_64 = arith.constant 0 : index
    %138 = vector.load %arg19[%c0_62, %c0_63, %c0_64] : memref<1x4x32xf32, #tpu.memory_space<vmem>>, vector<1x4x32xf32>
    tpu.vector_store %arg19[%c0_62, %c0_63, %c0_64], %137 {strides = array<i32>} : memref<1x4x32xf32, #tpu.memory_space<vmem>>, vector<1x4x32xf32>,
    return
  }
  func.func @transform_0(%arg0: i32) -> (i32, i32, i32) {
    %c0_i32 = arith.constant 0 : i32
    %c0_i32_0 = arith.constant 0 : i32
    %c0_i32_1 = arith.constant 0 : i32
    return %arg0, %c0_i32, %c0_i32_0 : i32, i32, i32
  }
  func.func @transform_1(%arg0: i32) -> (i32, i32, i32) {
    %c0_i32 = arith.constant 0 : i32
    %c0_i32_0 = arith.constant 0 : i32
    %c0_i32_1 = arith.constant 0 : i32
    return %arg0, %c0_i32, %c0_i32_0 : i32, i32, i32
  }
  func.func @transform_2(%arg0: i32) -> (i32, i32) {
    %c0_i32 = arith.constant 0 : i32
    %c0_i32_0 = arith.constant 0 : i32
    %c0_i32_1 = arith.constant 0 : i32
    return %c0_i32, %c0_i32_0 : i32, i32
  }
  func.func @transform_3(%arg0: i32) -> (i32, i32) {
    %c0_i32 = arith.constant 0 : i32
    %c0_i32_0 = arith.constant 0 : i32
    %c0_i32_1 = arith.constant 0 : i32
    return %c0_i32, %c0_i32_0 : i32, i32
  }
  func.func @transform_4(%arg0: i32) -> (i32, i32) {
    %c0_i32 = arith.constant 0 : i32
    %c0_i32_0 = arith.constant 0 : i32
    %c0_i32_1 = arith.constant 0 : i32
    return %c0_i32, %c0_i32_0 : i32, i32
  }
  func.func @transform_5(%arg0: i32) -> (i32, i32) {
    %c0_i32 = arith.constant 0 : i32
    %c0_i32_0 = arith.constant 0 : i32
    %c0_i32_1 = arith.constant 0 : i32
    return %c0_i32, %c0_i32_0 : i32, i32
  }
  func.func @transform_6(%arg0: i32) -> (i32, i32) {
    %c0_i32 = arith.constant 0 : i32
    %c0_i32_0 = arith.constant 0 : i32
    %c0_i32_1 = arith.constant 0 : i32
    return %c0_i32, %c0_i32_0 : i32, i32
  }
  func.func @transform_7(%arg0: i32) -> (i32, i32) {
    %c0_i32 = arith.constant 0 : i32
    %c0_i32_0 = arith.constant 0 : i32
    %c0_i32_1 = arith.constant 0 : i32
    return %c0_i32, %c0_i32_0 : i32, i32
  }
  func.func @transform_8(%arg0: i32) -> (i32, i32) {
    %c0_i32 = arith.constant 0 : i32
    %c0_i32_0 = arith.constant 0 : i32
    %c0_i32_1 = arith.constant 0 : i32
    return %c0_i32, %c0_i32_0 : i32, i32
  }
  func.func @transform_9(%arg0: i32) -> (i32, i32) {
    %c0_i32 = arith.constant 0 : i32
    %c0_i32_0 = arith.constant 0 : i32
    %c0_i32_1 = arith.constant 0 : i32
    return %c0_i32, %c0_i32_0 : i32, i32
  }
  func.func @transform_10(%arg0: i32) -> (i32, i32) {
    %c0_i32 = arith.constant 0 : i32
    %c0_i32_0 = arith.constant 0 : i32
    %c0_i32_1 = arith.constant 0 : i32
    return %c0_i32, %c0_i32_0 : i32, i32
  }
  func.func @transform_11(%arg0: i32) -> (i32, i32) {
    %c0_i32 = arith.constant 0 : i32
    %c0_i32_0 = arith.constant 0 : i32
    %c0_i32_1 = arith.constant 0 : i32
    return %c0_i32, %c0_i32_0 : i32, i32
  }
  func.func @transform_12(%arg0: i32) -> (i32, i32) {
    %c0_i32 = arith.constant 0 : i32
    %c0_i32_0 = arith.constant 0 : i32
    %c0_i32_1 = arith.constant 0 : i32
    return %c0_i32, %c0_i32_0 : i32, i32
  }
  func.func @transform_13(%arg0: i32) -> (i32, i32) {
    %c0_i32 = arith.constant 0 : i32
    %c0_i32_0 = arith.constant 0 : i32
    %c0_i32_1 = arith.constant 0 : i32
    return %c0_i32, %c0_i32_0 : i32, i32
  }
  func.func @transform_14(%arg0: i32) -> (i32, i32) {
    %c0_i32 = arith.constant 0 : i32
    %c0_i32_0 = arith.constant 0 : i32
    %c0_i32_1 = arith.constant 0 : i32
    return %c0_i32, %c0_i32_0 : i32, i32
  }
  func.func @transform_15(%arg0: i32) -> (i32, i32) {
    %c0_i32 = arith.constant 0 : i32
    %c0_i32_0 = arith.constant 0 : i32
    %c0_i32_1 = arith.constant 0 : i32
    return %c0_i32, %c0_i32_0 : i32, i32
  }
  func.func @transform_16(%arg0: i32) -> (i32, i32) {
    %c0_i32 = arith.constant 0 : i32
    %c0_i32_0 = arith.constant 0 : i32
    %c0_i32_1 = arith.constant 0 : i32
    return %c0_i32, %c0_i32_0 : i32, i32
  }
  func.func @transform_17(%arg0: i32) -> (i32, i32) {
    %c0_i32 = arith.constant 0 : i32
    %c0_i32_0 = arith.constant 0 : i32
    %c0_i32_1 = arith.constant 0 : i32
    return %c0_i32, %c0_i32_0 : i32, i32
  }
  func.func @transform_18(%arg0: i32) -> (i32, i32, i32) {
    %c0_i32 = arith.constant 0 : i32
    %c0_i32_0 = arith.constant 0 : i32
    %c0_i32_1 = arith.constant 0 : i32
    return %arg0, %c0_i32, %c0_i32_0 : i32, i32, i32
  }
}

module attributes {stable_mosaic.version = 11 : i64} {
  func.func @kernel(%arg0: i32, %arg1: memref<1x4x32xf32, #tpu.memory_space<vmem>>, %arg2: memref<1x8x32xf32, #tpu.memory_space<vmem>>, %arg3: memref<1x32xf32, #tpu.memory_space<vmem>>, %arg4: memref<1x32xf32, #tpu.memory_space<vmem>>, %arg5: memref<1x32xf32, #tpu.memory_space<vmem>>, %arg6: memref<1x32xf32, #tpu.memory_space<vmem>>, %arg7: memref<32x32xf32, #tpu.memory_space<vmem>>, %arg8: memref<1x32xf32, #tpu.memory_space<vmem>>, %arg9: memref<32x64xf32, #tpu.memory_space<vmem>>, %arg10: memref<1x64xf32, #tpu.memory_space<vmem>>, %arg11: memref<32x32xf32, #tpu.memory_space<vmem>>, %arg12: memref<1x32xf32, #tpu.memory_space<vmem>>, %arg13: memref<1x32xf32, #tpu.memory_space<vmem>>, %arg14: memref<1x32xf32, #tpu.memory_space<vmem>>, %arg15: memref<32x128xf32, #tpu.memory_space<vmem>>, %arg16: memref<1x128xf32, #tpu.memory_space<vmem>>, %arg17: memref<128x32xf32, #tpu.memory_space<vmem>>, %arg18: memref<1x32xf32, #tpu.memory_space<vmem>>, %arg19: memref<1x4x32xf32, #tpu.memory_space<vmem>>) attributes {dimension_semantics = [#tpu.dimension_semantics<parallel>], iteration_bounds = array<i64: 2>, scalar_prefetch = 0 : i64, scratch_operands = 0 : i64, tpu.core_type = #tpu.core_type<tc>, window_params = [{transform_indices = @transform_0, window_bounds = array<i64: 1, 4, 32>}, {transform_indices = @transform_1, window_bounds = array<i64: 1, 8, 32>}, {pipeline_mode = #tpu.pipeline_mode<synchronous>, transform_indices = @transform_2, window_bounds = array<i64: 1, 32>}, {pipeline_mode = #tpu.pipeline_mode<synchronous>, transform_indices = @transform_3, window_bounds = array<i64: 1, 32>}, {pipeline_mode = #tpu.pipeline_mode<synchronous>, transform_indices = @transform_4, window_bounds = array<i64: 1, 32>}, {pipeline_mode = #tpu.pipeline_mode<synchronous>, transform_indices = @transform_5, window_bounds = array<i64: 1, 32>}, {pipeline_mode = #tpu.pipeline_mode<synchronous>, transform_indices = @transform_6, window_bounds = array<i64: 32, 32>}, {pipeline_mode = #tpu.pipeline_mode<synchronous>, transform_indices = @transform_7, window_bounds = array<i64: 1, 32>}, {pipeline_mode = #tpu.pipeline_mode<synchronous>, transform_indices = @transform_8, window_bounds = array<i64: 32, 64>}, {pipeline_mode = #tpu.pipeline_mode<synchronous>, transform_indices = @transform_9, window_bounds = array<i64: 1, 64>}, {pipeline_mode = #tpu.pipeline_mode<synchronous>, transform_indices = @transform_10, window_bounds = array<i64: 32, 32>}, {pipeline_mode = #tpu.pipeline_mode<synchronous>, transform_indices = @transform_11, window_bounds = array<i64: 1, 32>}, {pipeline_mode = #tpu.pipeline_mode<synchronous>, transform_indices = @transform_12, window_bounds = array<i64: 1, 32>}, {pipeline_mode = #tpu.pipeline_mode<synchronous>, transform_indices = @transform_13, window_bounds = array<i64: 1, 32>}, {pipeline_mode = #tpu.pipeline_mode<synchronous>, transform_indices = @transform_14, window_bounds = array<i64: 32, 128>}, {pipeline_mode = #tpu.pipeline_mode<synchronous>, transform_indices = @transform_15, window_bounds = array<i64: 1, 128>}, {pipeline_mode = #tpu.pipeline_mode<synchronous>, transform_indices = @transform_16, window_bounds = array<i64: 128, 32>}, {pipeline_mode = #tpu.pipeline_mode<synchronous>, transform_indices = @transform_17, window_bounds = array<i64: 1, 32>}, {transform_indices = @transform_18, window_bounds = array<i64: 1, 4, 32>}]} {
    %c0 = arith.constant 0 : index
    %c0_0 = arith.constant 0 : index
    %c0_1 = arith.constant 0 : index
    %0 = vector.load %arg1[%c0, %c0_0, %c0_1] : memref<1x4x32xf32, #tpu.memory_space<vmem>>, vector<1x4x32xf32>
    %1 = vector.shape_cast %0 : vector<1x4x32xf32> to vector<4x32xf32>
    %c0_2 = arith.constant 0 : index
    %c0_3 = arith.constant 0 : index
    %c0_4 = arith.constant 0 : index
    %2 = vector.load %arg2[%c0_2, %c0_3, %c0_4] : memref<1x8x32xf32, #tpu.memory_space<vmem>>, vector<1x8x32xf32>
    %3 = vector.shape_cast %2 : vector<1x8x32xf32> to vector<8x32xf32>
    %c0_5 = arith.constant 0 : index
    %c0_6 = arith.constant 0 : index
    %4 = vector.load %arg3[%c0_5, %c0_6] : memref<1x32xf32, #tpu.memory_space<vmem>>, vector<1x32xf32>
    %c0_7 = arith.constant 0 : index
    %c0_8 = arith.constant 0 : index
    %5 = vector.load %arg4[%c0_7, %c0_8] : memref<1x32xf32, #tpu.memory_space<vmem>>, vector<1x32xf32>
    %cst = arith.constant dense<0.000000e+00> : vector<4xf32>
    %6 = vector.multi_reduction <add>, %1, %cst [1] : vector<4x32xf32> to vector<4xf32>
    %7 = vector.shape_cast %6 : vector<4xf32> to vector<4x1xf32>
    %cst_9 = arith.constant 3.200000e+01 : f32
    %8 = vector.broadcast %cst_9 : f32 to vector<4x1xf32>
    %9 = arith.divf %7, %8 : vector<4x1xf32>
    %10 = vector.broadcast %9 : vector<4x1xf32> to vector<4x32xf32>
    %11 = arith.subf %1, %10 : vector<4x32xf32>
    %12 = arith.mulf %11, %11 : vector<4x32xf32>
    %cst_10 = arith.constant dense<0.000000e+00> : vector<4xf32>
    %13 = vector.multi_reduction <add>, %12, %cst_10 [1] : vector<4x32xf32> to vector<4xf32>
    %14 = vector.shape_cast %13 : vector<4xf32> to vector<4x1xf32>
    %cst_11 = arith.constant 3.200000e+01 : f32
    %15 = vector.broadcast %cst_11 : f32 to vector<4x1xf32>
    %16 = arith.divf %14, %15 : vector<4x1xf32>
    %17 = vector.broadcast %9 : vector<4x1xf32> to vector<4x32xf32>
    %18 = arith.subf %1, %17 : vector<4x32xf32>
    %cst_12 = arith.constant 9.99999974E-6 : f32
    %19 = vector.broadcast %cst_12 : f32 to vector<4x1xf32>
    %20 = arith.addf %16, %19 : vector<4x1xf32>
    %21 = math.rsqrt %20 : vector<4x1xf32>
    %22 = vector.broadcast %21 : vector<4x1xf32> to vector<4x32xf32>
    %23 = arith.mulf %18, %22 : vector<4x32xf32>
    %24 = vector.broadcast %4 : vector<1x32xf32> to vector<4x32xf32>
    %25 = arith.mulf %23, %24 : vector<4x32xf32>
    %26 = vector.broadcast %5 : vector<1x32xf32> to vector<4x32xf32>
    %27 = arith.addf %25, %26 : vector<4x32xf32>
    %c0_13 = arith.constant 0 : index
    %c0_14 = arith.constant 0 : index
    %28 = vector.load %arg5[%c0_13, %c0_14] : memref<1x32xf32, #tpu.memory_space<vmem>>, vector<1x32xf32>
    %c0_15 = arith.constant 0 : index
    %c0_16 = arith.constant 0 : index
    %29 = vector.load %arg6[%c0_15, %c0_16] : memref<1x32xf32, #tpu.memory_space<vmem>>, vector<1x32xf32>
    %cst_17 = arith.constant dense<0.000000e+00> : vector<8xf32>
    %30 = vector.multi_reduction <add>, %3, %cst_17 [1] : vector<8x32xf32> to vector<8xf32>
    %31 = vector.shape_cast %30 : vector<8xf32> to vector<8x1xf32>
    %cst_18 = arith.constant 3.200000e+01 : f32
    %32 = vector.broadcast %cst_18 : f32 to vector<8x1xf32>
    %33 = arith.divf %31, %32 : vector<8x1xf32>
    %34 = vector.broadcast %33 : vector<8x1xf32> to vector<8x32xf32>
    %35 = arith.subf %3, %34 : vector<8x32xf32>
    %36 = arith.mulf %35, %35 : vector<8x32xf32>
    %cst_19 = arith.constant dense<0.000000e+00> : vector<8xf32>
    %37 = vector.multi_reduction <add>, %36, %cst_19 [1] : vector<8x32xf32> to vector<8xf32>
    %38 = vector.shape_cast %37 : vector<8xf32> to vector<8x1xf32>
    %cst_20 = arith.constant 3.200000e+01 : f32
    %39 = vector.broadcast %cst_20 : f32 to vector<8x1xf32>
    %40 = arith.divf %38, %39 : vector<8x1xf32>
    %41 = vector.broadcast %33 : vector<8x1xf32> to vector<8x32xf32>
    %42 = arith.subf %3, %41 : vector<8x32xf32>
    %cst_21 = arith.constant 9.99999974E-6 : f32
    %43 = vector.broadcast %cst_21 : f32 to vector<8x1xf32>
    %44 = arith.addf %40, %43 : vector<8x1xf32>
    %45 = math.rsqrt %44 : vector<8x1xf32>
    %46 = vector.broadcast %45 : vector<8x1xf32> to vector<8x32xf32>
    %47 = arith.mulf %42, %46 : vector<8x32xf32>
    %48 = vector.broadcast %28 : vector<1x32xf32> to vector<8x32xf32>
    %49 = arith.mulf %47, %48 : vector<8x32xf32>
    %50 = vector.broadcast %29 : vector<1x32xf32> to vector<8x32xf32>
    %51 = arith.addf %49, %50 : vector<8x32xf32>
    %c0_22 = arith.constant 0 : index
    %c0_23 = arith.constant 0 : index
    %52 = vector.load %arg7[%c0_22, %c0_23] : memref<32x32xf32, #tpu.memory_space<vmem>>, vector<32x32xf32>
    %cst_24 = arith.constant dense<0.000000e+00> : vector<4x32xf32>
    %53 = tpu.matmul %27, %52, %cst_24 {dimension_numbers = #tpu.dot_dimension_numbers<[1], [0], [0], [1], [0, 0, 1, 1], [], []>} : vector<4x32xf32>, vector<32x32xf32>, vector<4x32xf32> -> vector<4x32xf32>
    %c0_25 = arith.constant 0 : index
    %c0_26 = arith.constant 0 : index
    %54 = vector.load %arg8[%c0_25, %c0_26] : memref<1x32xf32, #tpu.memory_space<vmem>>, vector<1x32xf32>
    %55 = vector.broadcast %54 : vector<1x32xf32> to vector<4x32xf32>
    %56 = arith.addf %53, %55 : vector<4x32xf32>
    %c0_27 = arith.constant 0 : index
    %c0_28 = arith.constant 0 : index
    %57 = vector.load %arg9[%c0_27, %c0_28] : memref<32x64xf32, #tpu.memory_space<vmem>>, vector<32x64xf32>
    %cst_29 = arith.constant dense<0.000000e+00> : vector<8x64xf32>
    %58 = tpu.matmul %51, %57, %cst_29 {dimension_numbers = #tpu.dot_dimension_numbers<[1], [0], [0], [1], [0, 0, 1, 1], [], []>} : vector<8x32xf32>, vector<32x64xf32>, vector<8x64xf32> -> vector<8x64xf32>
    %c0_30 = arith.constant 0 : index
    %c0_31 = arith.constant 0 : index
    %59 = vector.load %arg10[%c0_30, %c0_31] : memref<1x64xf32, #tpu.memory_space<vmem>>, vector<1x64xf32>
    %60 = vector.broadcast %59 : vector<1x64xf32> to vector<8x64xf32>
    %61 = arith.addf %58, %60 : vector<8x64xf32>
    %62 = vector.extract_strided_slice %61 {offsets = [0, 0], sizes = [8, 32], strides = [1, 1]} : vector<8x64xf32> to vector<8x32xf32>
    %63 = vector.extract_strided_slice %61 {offsets = [0, 32], sizes = [8, 32], strides = [1, 1]} : vector<8x64xf32> to vector<8x32xf32>
    %64 = vector.shape_cast %56 : vector<4x32xf32> to vector<1x4x4x8xf32>
    %65 = tpu.transpose %64, [0, 2, 1, 3] : vector<1x4x4x8xf32> -> vector<1x4x4x8xf32>
    %66 = vector.shape_cast %65 : vector<1x4x4x8xf32> to vector<4x4x8xf32>
    %67 = vector.shape_cast %62 : vector<8x32xf32> to vector<1x8x4x8xf32>
    %68 = tpu.transpose %67, [0, 2, 1, 3] : vector<1x8x4x8xf32> -> vector<1x4x8x8xf32>
    %69 = vector.shape_cast %68 : vector<1x4x8x8xf32> to vector<4x8x8xf32>
    %70 = vector.shape_cast %63 : vector<8x32xf32> to vector<1x8x4x8xf32>
    %71 = tpu.transpose %70, [0, 2, 1, 3] : vector<1x8x4x8xf32> -> vector<1x4x8x8xf32>
    %72 = vector.shape_cast %71 : vector<1x4x8x8xf32> to vector<4x8x8xf32>
    "tpu.trace_start"() <{level = 10 : i32, message = "nqd,nkd->nqk"}> : () -> ()
    %cst_32 = arith.constant dense<0.000000e+00> : vector<4x4x8xf32>
    %73 = tpu.matmul %66, %69, %cst_32 {dimension_numbers = #tpu.dot_dimension_numbers<[2], [2], [1], [1], [0, 0, 0, 1, 1, 1], [0], [0]>} : vector<4x4x8xf32>, vector<4x8x8xf32>, vector<4x4x8xf32> -> vector<4x4x8xf32>
    "tpu.trace_stop"() : () -> ()
    %cst_33 = arith.constant dense<0xFF800000> : vector<4x4xf32>
    %74 = vector.multi_reduction <maximumf>, %73, %cst_33 [2] : vector<4x4x8xf32> to vector<4x4xf32>
    %75 = vector.shape_cast %74 : vector<4x4xf32> to vector<4x4x1xf32>
    %76 = vector.broadcast %75 : vector<4x4x1xf32> to vector<4x4x8xf32>
    %77 = arith.subf %73, %76 : vector<4x4x8xf32>
    %78 = math.exp %77 : vector<4x4x8xf32>
    %cst_34 = arith.constant dense<0.000000e+00> : vector<4x4xf32>
    %79 = vector.multi_reduction <add>, %78, %cst_34 [2] : vector<4x4x8xf32> to vector<4x4xf32>
    %80 = vector.shape_cast %79 : vector<4x4xf32> to vector<4x4x1xf32>
    %81 = tpu.reciprocal %80 {approx = true} : vector<4x4x1xf32> -> vector<4x4x1xf32>
    %82 = vector.broadcast %81 : vector<4x4x1xf32> to vector<4x4x8xf32>
    %83 = arith.mulf %78, %82 : vector<4x4x8xf32>
    "tpu.trace_start"() <{level = 10 : i32, message = "nqk,nkd->nqd"}> : () -> ()
    %cst_35 = arith.constant dense<0.000000e+00> : vector<4x4x8xf32>
    %84 = tpu.matmul %83, %72, %cst_35 {dimension_numbers = #tpu.dot_dimension_numbers<[2], [1], [1], [2], [0, 0, 0, 1, 1, 2], [0], [0]>} : vector<4x4x8xf32>, vector<4x8x8xf32>, vector<4x4x8xf32> -> vector<4x4x8xf32>
    "tpu.trace_stop"() : () -> ()
    %85 = vector.shape_cast %84 : vector<4x4x8xf32> to vector<1x4x4x8xf32>
    %86 = tpu.transpose %85, [0, 2, 1, 3] : vector<1x4x4x8xf32> -> vector<1x4x4x8xf32>
    %87 = vector.shape_cast %86 : vector<1x4x4x8xf32> to vector<4x32xf32>
    %c0_36 = arith.constant 0 : index
    %c0_37 = arith.constant 0 : index
    %88 = vector.load %arg11[%c0_36, %c0_37] : memref<32x32xf32, #tpu.memory_space<vmem>>, vector<32x32xf32>
    %cst_38 = arith.constant dense<0.000000e+00> : vector<4x32xf32>
    %89 = tpu.matmul %87, %88, %cst_38 {dimension_numbers = #tpu.dot_dimension_numbers<[1], [0], [0], [1], [0, 0, 1, 1], [], []>} : vector<4x32xf32>, vector<32x32xf32>, vector<4x32xf32> -> vector<4x32xf32>
    %c0_39 = arith.constant 0 : index
    %c0_40 = arith.constant 0 : index
    %90 = vector.load %arg12[%c0_39, %c0_40] : memref<1x32xf32, #tpu.memory_space<vmem>>, vector<1x32xf32>
    %91 = vector.broadcast %90 : vector<1x32xf32> to vector<4x32xf32>
    %92 = arith.addf %89, %91 : vector<4x32xf32>
    %93 = arith.addf %1, %92 : vector<4x32xf32>
    %c0_41 = arith.constant 0 : index
    %c0_42 = arith.constant 0 : index
    %94 = vector.load %arg13[%c0_41, %c0_42] : memref<1x32xf32, #tpu.memory_space<vmem>>, vector<1x32xf32>
    %c0_43 = arith.constant 0 : index
    %c0_44 = arith.constant 0 : index
    %95 = vector.load %arg14[%c0_43, %c0_44] : memref<1x32xf32, #tpu.memory_space<vmem>>, vector<1x32xf32>
    %cst_45 = arith.constant dense<0.000000e+00> : vector<4xf32>
    %96 = vector.multi_reduction <add>, %93, %cst_45 [1] : vector<4x32xf32> to vector<4xf32>
    %97 = vector.shape_cast %96 : vector<4xf32> to vector<4x1xf32>
    %cst_46 = arith.constant 3.200000e+01 : f32
    %98 = vector.broadcast %cst_46 : f32 to vector<4x1xf32>
    %99 = arith.divf %97, %98 : vector<4x1xf32>
    %100 = vector.broadcast %99 : vector<4x1xf32> to vector<4x32xf32>
    %101 = arith.subf %93, %100 : vector<4x32xf32>
    %102 = arith.mulf %101, %101 : vector<4x32xf32>
    %cst_47 = arith.constant dense<0.000000e+00> : vector<4xf32>
    %103 = vector.multi_reduction <add>, %102, %cst_47 [1] : vector<4x32xf32> to vector<4xf32>
    %104 = vector.shape_cast %103 : vector<4xf32> to vector<4x1xf32>
    %cst_48 = arith.constant 3.200000e+01 : f32
    %105 = vector.broadcast %cst_48 : f32 to vector<4x1xf32>
    %106 = arith.divf %104, %105 : vector<4x1xf32>
    %107 = vector.broadcast %99 : vector<4x1xf32> to vector<4x32xf32>
    %108 = arith.subf %93, %107 : vector<4x32xf32>
    %cst_49 = arith.constant 9.99999974E-6 : f32
    %109 = vector.broadcast %cst_49 : f32 to vector<4x1xf32>
    %110 = arith.addf %106, %109 : vector<4x1xf32>
    %111 = math.rsqrt %110 : vector<4x1xf32>
    %112 = vector.broadcast %111 : vector<4x1xf32> to vector<4x32xf32>
    %113 = arith.mulf %108, %112 : vector<4x32xf32>
    %114 = vector.broadcast %94 : vector<1x32xf32> to vector<4x32xf32>
    %115 = arith.mulf %113, %114 : vector<4x32xf32>
    %116 = vector.broadcast %95 : vector<1x32xf32> to vector<4x32xf32>
    %117 = arith.addf %115, %116 : vector<4x32xf32>
    %c0_50 = arith.constant 0 : index
    %c0_51 = arith.constant 0 : index
    %118 = vector.load %arg15[%c0_50, %c0_51] : memref<32x128xf32, #tpu.memory_space<vmem>>, vector<32x128xf32>
    %cst_52 = arith.constant dense<0.000000e+00> : vector<4x128xf32>
    %119 = tpu.matmul %117, %118, %cst_52 {dimension_numbers = #tpu.dot_dimension_numbers<[1], [0], [0], [1], [0, 0, 1, 1], [], []>} : vector<4x32xf32>, vector<32x128xf32>, vector<4x128xf32> -> vector<4x128xf32>
    %c0_53 = arith.constant 0 : index
    %c0_54 = arith.constant 0 : index
    %120 = vector.load %arg16[%c0_53, %c0_54] : memref<1x128xf32, #tpu.memory_space<vmem>>, vector<1x128xf32>
    %121 = vector.broadcast %120 : vector<1x128xf32> to vector<4x128xf32>
    %122 = arith.addf %119, %121 : vector<4x128xf32>
    %cst_55 = arith.constant 1.702000e+00 : f32
    %123 = vector.broadcast %cst_55 : f32 to vector<4x128xf32>
    %124 = arith.mulf %123, %122 : vector<4x128xf32>
    %125 = arith.negf %124 : vector<4x128xf32>
    %126 = math.exp %125 : vector<4x128xf32>
    %cst_56 = arith.constant 1.000000e+00 : f32
    %127 = vector.broadcast %cst_56 : f32 to vector<4x128xf32>
    %128 = arith.addf %127, %126 : vector<4x128xf32>
    %129 = arith.divf %127, %128 : vector<4x128xf32>
    %130 = arith.mulf %122, %129 : vector<4x128xf32>
    %c0_57 = arith.constant 0 : index
    %c0_58 = arith.constant 0 : index
    %131 = vector.load %arg17[%c0_57, %c0_58] : memref<128x32xf32, #tpu.memory_space<vmem>>, vector<128x32xf32>
    %cst_59 = arith.constant dense<0.000000e+00> : vector<4x32xf32>
    %132 = tpu.matmul %130, %131, %cst_59 {dimension_numbers = #tpu.dot_dimension_numbers<[1], [0], [0], [1], [0, 0, 1, 1], [], []>} : vector<4x128xf32>, vector<128x32xf32>, vector<4x32xf32> -> vector<4x32xf32>
    %133 = arith.addf %93, %132 : vector<4x32xf32>
    %c0_60 = arith.constant 0 : index
    %c0_61 = arith.constant 0 : index
    %134 = vector.load %arg18[%c0_60, %c0_61] : memref<1x32xf32, #tpu.memory_space<vmem>>, vector<1x32xf32>
    %135 = vector.broadcast %134 : vector<1x32xf32> to vector<4x32xf32>
    %136 = arith.addf %133, %135 : vector<4x32xf32>
    %137 = vector.shape_cast %136 : vector<4x32xf32> to vector<1x4x32xf32>
    %c0_62 = arith.constant 0 : index
    %c0_63 = arith.constant 0 : index
    %c0_64 = arith.constant 0 : index
    %138 = vector.load %arg19[%c0_62, %c0_63, %c0_64] : memref<1x4x32xf32, #tpu.memory_space<vmem>>, vector<1x4x32xf32>
    tpu.vector_store %arg19[%c0_62, %c0_63, %c0_64], %137 {strides = array<i32>} : memref<1x4x32xf32, #tpu.memory_space<vmem>>, vector<1x4x32xf32>,
    return
  }
  func.func @transform_0(%arg0: i32) -> (i32, i32, i32) {
    %c0_i32 = arith.constant 0 : i32
    %c0_i32_0 = arith.constant 0 : i32
    %c0_i32_1 = arith.constant 0 : i32
    return %arg0, %c0_i32, %c0_i32_0 : i32, i32, i32
  }
  func.func @transform_1(%arg0: i32) -> (i32, i32, i32) {
    %c0_i32 = arith.constant 0 : i32
    %c0_i32_0 = arith.constant 0 : i32
    %c0_i32_1 = arith.constant 0 : i32
    return %arg0, %c0_i32, %c0_i32_0 : i32, i32, i32
  }
  func.func @transform_2(%arg0: i32) -> (i32, i32) {
    %c0_i32 = arith.constant 0 : i32
    %c0_i32_0 = arith.constant 0 : i32
    %c0_i32_1 = arith.constant 0 : i32
    return %c0_i32, %c0_i32_0 : i32, i32
  }
  func.func @transform_3(%arg0: i32) -> (i32, i32) {
    %c0_i32 = arith.constant 0 : i32
    %c0_i32_0 = arith.constant 0 : i32
    %c0_i32_1 = arith.constant 0 : i32
    return %c0_i32, %c0_i32_0 : i32, i32
  }
  func.func @transform_4(%arg0: i32) -> (i32, i32) {
    %c0_i32 = arith.constant 0 : i32
    %c0_i32_0 = arith.constant 0 : i32
    %c0_i32_1 = arith.constant 0 : i32
    return %c0_i32, %c0_i32_0 : i32, i32
  }
  func.func @transform_5(%arg0: i32) -> (i32, i32) {
    %c0_i32 = arith.constant 0 : i32
    %c0_i32_0 = arith.constant 0 : i32
    %c0_i32_1 = arith.constant 0 : i32
    return %c0_i32, %c0_i32_0 : i32, i32
  }
  func.func @transform_6(%arg0: i32) -> (i32, i32) {
    %c0_i32 = arith.constant 0 : i32
    %c0_i32_0 = arith.constant 0 : i32
    %c0_i32_1 = arith.constant 0 : i32
    return %c0_i32, %c0_i32_0 : i32, i32
  }
  func.func @transform_7(%arg0: i32) -> (i32, i32) {
    %c0_i32 = arith.constant 0 : i32
    %c0_i32_0 = arith.constant 0 : i32
    %c0_i32_1 = arith.constant 0 : i32
    return %c0_i32, %c0_i32_0 : i32, i32
  }
  func.func @transform_8(%arg0: i32) -> (i32, i32) {
    %c0_i32 = arith.constant 0 : i32
    %c0_i32_0 = arith.constant 0 : i32
    %c0_i32_1 = arith.constant 0 : i32
    return %c0_i32, %c0_i32_0 : i32, i32
  }
  func.func @transform_9(%arg0: i32) -> (i32, i32) {
    %c0_i32 = arith.constant 0 : i32
    %c0_i32_0 = arith.constant 0 : i32
    %c0_i32_1 = arith.constant 0 : i32
    return %c0_i32, %c0_i32_0 : i32, i32
  }
  func.func @transform_10(%arg0: i32) -> (i32, i32) {
    %c0_i32 = arith.constant 0 : i32
    %c0_i32_0 = arith.constant 0 : i32
    %c0_i32_1 = arith.constant 0 : i32
    return %c0_i32, %c0_i32_0 : i32, i32
  }
  func.func @transform_11(%arg0: i32) -> (i32, i32) {
    %c0_i32 = arith.constant 0 : i32
    %c0_i32_0 = arith.constant 0 : i32
    %c0_i32_1 = arith.constant 0 : i32
    return %c0_i32, %c0_i32_0 : i32, i32
  }
  func.func @transform_12(%arg0: i32) -> (i32, i32) {
    %c0_i32 = arith.constant 0 : i32
    %c0_i32_0 = arith.constant 0 : i32
    %c0_i32_1 = arith.constant 0 : i32
    return %c0_i32, %c0_i32_0 : i32, i32
  }
  func.func @transform_13(%arg0: i32) -> (i32, i32) {
    %c0_i32 = arith.constant 0 : i32
    %c0_i32_0 = arith.constant 0 : i32
    %c0_i32_1 = arith.constant 0 : i32
    return %c0_i32, %c0_i32_0 : i32, i32
  }
  func.func @transform_14(%arg0: i32) -> (i32, i32) {
    %c0_i32 = arith.constant 0 : i32
    %c0_i32_0 = arith.constant 0 : i32
    %c0_i32_1 = arith.constant 0 : i32
    return %c0_i32, %c0_i32_0 : i32, i32
  }
  func.func @transform_15(%arg0: i32) -> (i32, i32) {
    %c0_i32 = arith.constant 0 : i32
    %c0_i32_0 = arith.constant 0 : i32
    %c0_i32_1 = arith.constant 0 : i32
    return %c0_i32, %c0_i32_0 : i32, i32
  }
  func.func @transform_16(%arg0: i32) -> (i32, i32) {
    %c0_i32 = arith.constant 0 : i32
    %c0_i32_0 = arith.constant 0 : i32
    %c0_i32_1 = arith.constant 0 : i32
    return %c0_i32, %c0_i32_0 : i32, i32
  }
  func.func @transform_17(%arg0: i32) -> (i32, i32) {
    %c0_i32 = arith.constant 0 : i32
    %c0_i32_0 = arith.constant 0 : i32
    %c0_i32_1 = arith.constant 0 : i32
    return %c0_i32, %c0_i32_0 : i32, i32
  }
  func.func @transform_18(%arg0: i32) -> (i32, i32, i32) {
    %c0_i32 = arith.constant 0 : i32
    %c0_i32_0 = arith.constant 0 : i32
    %c0_i32_1 = arith.constant 0 : i32
    return %arg0, %c0_i32, %c0_i32_0 : i32, i32, i32
  }
}

</mosaic_0001>

<bundles_post_ra>
// kernel: spatial_aggregation_transformer.3
= control target key start
LH: loop header
LB: loop body
LE: loop exit
PB: predicated region body
PF: predicated region fallthrough
CT: control target
= control target key end

     0   :  { %s2318_s0 = inlined_call_operand.vmem [shape: f32[2,4,32], index: 0, kind: input, shape index: {}]   ;;  %s2319_s1 = inlined_call_operand.vmem [shape: f32[2,8,32], index: 1, kind: input, shape index: {}]   ;;  %s2320_s2 = inlined_call_operand.vmem [shape: f32[1,32], index: 2, kind: input, shape index: {}]   ;;  %s2321_s3 = inlined_call_operand.vmem [shape: f32[1,32], index: 3, kind: input, shape index: {}]   ;;  %s2322_s4 = inlined_call_operand.vmem [shape: f32[1,32], index: 4, kind: input, shape index: {}]   ;;  %s2323_s5 = inlined_call_operand.vmem [shape: f32[1,32], index: 5, kind: input, shape index: {}]   ;;  %s2324_s6 = inlined_call_operand.vmem [shape: f32[32,32], index: 6, kind: input, shape index: {}]   ;;  %s2325_s7 = inlined_call_operand.vmem [shape: f32[1,32], index: 7, kind: input, shape index: {}]   ;;  %s2326_s8 = inlined_call_operand.vmem [shape: f32[32,64], index: 8, kind: input, shape index: {}]   ;;  %s2327_s9 = inlined_call_operand.vmem [shape: f32[1,64], index: 9, kind: input, shape index: {}]   ;;  %s2328_s10 = inlined_call_operand.vmem [shape: f32[32,32], index: 10, kind: input, shape index: {}]   ;;  %s2329_s11 = inlined_call_operand.vmem [shape: f32[1,32], index: 11, kind: input, shape index: {}]   ;;  %s2330_s12 = inlined_call_operand.vmem [shape: f32[1,32], index: 12, kind: input, shape index: {}]   ;;  %s2331_s13 = inlined_call_operand.vmem [shape: f32[1,32], index: 13, kind: input, shape index: {}]   ;;  %s2332_s14 = inlined_call_operand.vmem [shape: f32[32,128], index: 14, kind: input, shape index: {}]   ;;  %s2333_s15 = inlined_call_operand.vmem [shape: f32[1,128], index: 15, kind: input, shape index: {}]   ;;  %s2334_s16 = inlined_call_operand.vmem [shape: f32[128,32], index: 16, kind: input, shape index: {}]   ;;  %s2335_s17 = inlined_call_operand.vmem [shape: f32[1,32], index: 17, kind: input, shape index: {}]   ;;  %s2336_s18 = inlined_call_operand.hbm [shape: f32[2,4,32], index: 18, kind: output, shape index: {}]  }
   0x1   :  { %2342 = sst [smem:[#allocation10_spill]] %s2318_s0 }
   0x2   :  { %2343 = sst [smem:[#allocation11_spill]] %s2319_s1 }
   0x3   :  { %2344 = sst [smem:[#allocation12_spill]] %s2320_s2 }
   0x4   :  { %2345 = sst [smem:[#allocation13_spill]] %s2321_s3 }
   0x5   :  { %23 = vsyncpa [#allocation3], 0 }
   0x6   :  { %25 = vsyncpa [#allocation3 + $0x1], 0  ;;  %s1888_s27 = smov 0   ;;  %s1890_s28 = smov 0  }
   0x7   :  { %s1892_s29 = smov 0   ;;  %s1894_s30 = smov 0  }
   0x8 LB: > { %2346 = sst [smem:[#allocation5_spill]] %s1769_s27  ;;  %s1909_s0 = sadd.s32 4294967295, %s1781_s30   ;;  %s1781_s30 = sphi %s1894_s30, %s2359_s30   ;;  %s1777_s29 = sphi %s1892_s29, %s2361_s29   ;;  %s1773_s28 = sphi %s1890_s28, %s2363_s28   ;;  %s1769_s27 = sphi %s1888_s27, %s2362_s27  }
   0x9   : > { %2347 = sst [smem:[#allocation6_spill]] %s1777_s29  ;;  %s1593_s19 = sadd.s32 4294967294, %s1781_s30  }
   0xa   : > { %s1913_s1 = sadd.s32 1, %s1781_s30   ;;  %s426_s20 = sadd.s32 1, %s1777_s29 }
   0xb   : > { %2348 = sst [smem:[#allocation7_spill]] %s1913_s1  ;;  %s423_s21 = ssub.s32 %s1781_s30, %s1913_s1 }
   0xc   : > { %p436_p0 = scmp.ne.s32.totalorder %s1777_s29, %s1773_s28  ;;  %p424_p1 = scmp.eq.s32.totalorder %s423_s21, 0 }
   0xd   : > { %p437_p2 = scmp.eq.s32.totalorder %s1909_s0, 1  ;;  %p442_p3 = scmp.ne.s32.totalorder %s1773_s28, %s1769_s27 }
   0xe   : > { %p443_p4 = scmp.eq.s32.totalorder %s1593_s19, 1  ;;  %p1596_p7 = scmp.ge.s32.totalorder %s1781_s30, 1 }
   0xf   : > { %s1924_s22 = scalar_select %p424_p1, %s1777_s29, %s426_s20  }
  0x10   : > { %p1926_p5 = por %p437_p2, %p436_p0  ;;  %p1930_p6 = por %p443_p4, %p442_p3 }
  0x11   : > { %2349 = sst [smem:[#allocation8_spill]] %s1924_s22  ;;  %p523_p8 = scmp.lt.s32.totalorder %s1781_s30, 3 }
  0x12   : > { %s2351_s23 = scalar_select %p1930_p6, 1, 0 }
  0x13   : > { %p524_p9 = pnand %p1596_p7, %p523_p8 }
  0x14   : > { %2352 = sst [smem:[#allocation9_spill]] %s2351_s23  ;;  %p580_p10 = scmp.lt.s32.totalorder (!%p524_p9), %s1909_s0, 1 }
  0x15   : > { %527 = sbr.rel (%p524_p9) target bundleno = 1943 (0x797), region = 92  ;;  %s2353_s21 = sld [smem:[#allocation11_spill]] (!%p524_p9) }
  0x16   : > { %s2354_s23 = sld [smem:[#allocation10_spill]] (!%p524_p9)  ;;  %s1786_s20 = smov (!%p524_p9), 112  }
  0x17   : > { %s2356_s3 = sld [smem:[#allocation13_spill]] (!%p524_p9)  ;;  %s1791_s29 = smov (!%p524_p9), 8  }
  0x18   : > { %s1792_s1 = smov (!%p524_p9), 24  }
  0x1a   : > { %s581_s24 = scalar_select %p580_p10, %s1909_s0, 1  ;;  %vm632_vm0 = vcmask 261120   ;;  %vm592_vm1 = vcmask 257024   ;;  %v1783_v4 = vmov 32.0   ;;  %v697_v21 = vld [vmem:[%s2326_s8 + $0x18] sm:$0xff]  ;;  %v696_v22 = vld [vmem:[%s2326_s8 + $0x10] sm:$0xff] }
  0x1b   : > { %1691 = vrcp.f32 %v1783_v4  ;;  %717 = vmatpush.msra.mxu1 %v697_v21  ;;  %v695_v23 = vld [vmem:[%s2326_s8 + $0x8] sm:$0xff]  ;;  %v694_v24 = vld [vmem:[%s2326_s8] sm:$0xff]  ;;  %v666_v25 = vld [vmem:[%s2324_s6 + $0x18] sm:$0xff]  ;;  %v1787_v4 = vmov 1983009808   ;;  %vm736_vm9 = vcmask 1047556  }
  0x1c   : > { %s1599_s25 = sshll.u32 %s581_s24, 3  ;;  %s1598_s26 = sshll.u32 %s581_s24, 2  ;;  %686 = vmatpush.msra.mxu0 %v666_v25  ;;  %v665_v26 = vld [vmem:[%s2324_s6 + $0x10] sm:$0xff]  ;;  %v664_v27 = vld [vmem:[%s2324_s6 + $0x8] sm:$0xff]  ;;  %v663_v30 = vld [vmem:[%s2324_s6] sm:$0xff]  ;;  %vm1033_vm10 = vcmask 64512  }
  0x1d   : > { %s587_s22 = scalar_lea.vmem %s2353_s21, %s1599_s25  ;;  %s583_s27 = scalar_lea.vmem %s2354_s23, %s1598_s26  ;;  %718 = vmatpush.msra.mxu1 %v696_v22  ;;  %v1680_v43 = vld [vmem:[%s2322_s4] ss:$0 sm:$0xff]  ;;  %vm1138_vm11 = vcmask 60416   ;;  %vm1343_vm12 = vcmask 130048   ;;  %vm1345_vm13 = vcmask 195584  }
  0x1e   : > { %v589_v0 = vld [vmem:[%s587_s22] sm:$0xff]  ;;  %687 = vmatpush.msra.mxu0 %v665_v26  ;;  %s1784_s24 = smov 120   ;;  %s1785_s25 = smov 104  }
  0x1f   : > { %v633_v1 = vsel %vm632_vm0, %v589_v0, 0.0  ;;  %v1945_v2 = vld [vmem:[%s583_s27] sm:$0xf]  ;;  %719 = vmatpush.msra.mxu1 %v695_v23  ;;  %s2355_s27 = sld [smem:[#allocation12_spill]]  ;;  %s1789_s21 = smov 96  }
  0x20   : > { %634 = vadd.xlane.f32.xlu0 %v633_v1  ;;  %v593_v3 = vsel %vm592_vm1, %v1945_v2, 0.0  ;;  %688 = vmatpush.msra.mxu0 %v664_v27  ;;  %v1681_v47 = vld [vmem:[%s2323_s5] ss:$0 sm:$0xff]  ;;  %s577_s23 = sand.u32 1, %s1773_s28  }
  0x21   : > { %v1692_v5 = vpop.eup %1691  ;;  %720 = vmatpush.msra.mxu1 %v694_v24  ;;  %v1683_v56 = vld [vmem:[%s2356_s3] ss:$0 sm:$0xff] }
  0x22   : > { %v597_v6 = vmul.f32 32.0, %v1692_v5  ;;  %vm601_vm2 = vweird.f32 %v1692_v5  ;;  %689 = vmatpush.msra.mxu0 %v663_v30  ;;  %v1684_v59 = vld [vmem:[%s2327_s9] ss:$0 sm:$0xff] }
  0x23   : > { %v1685_v62 = vld [vmem:[%s2325_s7] ss:$0 sm:$0xff] }
  0x24   : > { %v598_v7 = vsub.f32 1.0, %v597_v6 }
  0x25   : > { %v1682_v53 = vld [vmem:[%s2355_s27] ss:$0 sm:$0xff]  ;;  %s1790_s27 = smov 16  }
  0x26   : > { %v599_v8 = vmul.f32 %v1692_v5, %v598_v7 }
  0x28   : > { %594 = vadd.xlane.f32.xlu0 %v593_v3  ;;  %v600_v9 = vadd.f32 %v1692_v5, %v599_v8 }
  0x2a   : > { %v1949_v10 = vsel %vm601_vm2, %v1692_v5, %v600_v9  ;;  %v739_v5 = vunpack.c.l.s4 %v1787_v4 }
  0x2c   : > { %v2013_v9 = vunpack.c.0.s8 %v739_v5 }
  0x93   : > { %v635_v11 = vpop.xlane.xlu0 %634 }
  0x94   : > { %v636_v12 = vmul.f32 %v635_v11, %v1949_v10 }
  0x96   : > { %v637_v13 = vsub.f32 %v589_v0, %v636_v12 }
  0x98   : > { %v638_v14 = vmul.f32 %v637_v13, %v637_v13 }
  0x9a   : > { %v639_v15 = vsel %vm632_vm0, %v638_v14, 0.0 }
  0x9b   : > { %640 = vadd.xlane.f32.xlu1 %v639_v15  ;;  %v595_v16 = vpop.xlane.xlu0 %594 }
  0x9c   : > { %v603_v17 = vmul.f32 %v1949_v10, %v595_v16 }
  0x9e   : > { %v604_v18 = vsub.f32 %v1945_v2, %v603_v17 }
  0xa0   : > { %v605_v19 = vmul.f32 %v604_v18, %v604_v18 }
  0xa2   : > { %v606_v20 = vsel %vm592_vm1, %v605_v19, 0.0 }
  0xa3   : > { %607 = vadd.xlane.f32.xlu1 %v606_v20 }
 0x10e   : > { %v641_v28 = vpop.xlane.xlu1 %640 }
 0x10f   : > { %v642_v29 = vmul.f32 %v641_v28, %v1949_v10 }
 0x111   : > { %v643_v31 = vadd.f32 1e-05, %v642_v29 }
 0x113   : > { %1693 = vrsqrt.f32 %v643_v31  ;;  %vm650_vm4 = vweird.f32 %v643_v31 }
 0x116   : > { %v608_v32 = vpop.xlane.xlu1 %607 }
 0x117   : > { %v609_v33 = vmul.f32 %v608_v32, %v1949_v10 }
 0x119   : > { %v1694_v34 = vpop.eup %1693  ;;  %v610_v35 = vadd.f32 1e-05, %v609_v33 }
 0x11a   : > { %v645_v36 = vmul.f32 %v1694_v34, %v643_v31  ;;  %vm651_vm3 = vweird.f32 %v1694_v34 }
 0x11b   : > { %1695 = vrsqrt.f32 %v610_v35  ;;  %vm652_vm5 = vmor %vm650_vm4, %vm651_vm3  ;;  %vm617_vm7 = vweird.f32 %v610_v35 }
 0x11c   : > { %v646_v37 = vmul.f32 %v1694_v34, %v645_v36 }
 0x11e   : > { %v647_v38 = vmul.f32 0.5, %v646_v37 }
 0x120   : > { %v648_v39 = vsub.f32 1.5, %v647_v38 }
 0x121   : > { %v1696_v40 = vpop.eup %1695 }
 0x122   : > { %v649_v41 = vmul.f32 %v1694_v34, %v648_v39  ;;  %v612_v42 = vmul.f32 %v1696_v40, %v610_v35  ;;  %vm618_vm6 = vweird.f32 %v1696_v40 }
 0x123   : > { %vm619_vm8 = vmor %vm617_vm7, %vm618_vm6 }
 0x124   : > { %v653_v44 = vsel %vm652_vm5, %v1694_v34, %v649_v41  ;;  %v613_v45 = vmul.f32 %v1696_v40, %v612_v42 }
 0x125   : > { %v654_v46 = vmul.f32 %v653_v44, %v637_v13  ;;  %v1788_v13 = vmov 1934713408  }
 0x126   : > { %v614_v48 = vmul.f32 0.5, %v613_v45  ;;  %v753_v14 = vunpack.c.l.s4 %v1788_v13 }
 0x127   : > { %v658_v49 = vmul.f32 %v1680_v43, %v654_v46 }
 0x128   : > { %v615_v50 = vsub.f32 1.5, %v614_v48  ;;  %v2024_v19 = vunpack.c.0.s8 %v753_v14 }
 0x129   : > { %v662_v51 = vadd.f32 %v1681_v47, %v658_v49 }
 0x12a   : > { %v616_v52 = vmul.f32 %v1696_v40, %v615_v50 }
 0x12b   : > { %1601 = vmatmul.msk.f32.vlgmr.msra.gmra.mxu1 %vm632_vm0, %v662_v51 }
 0x12c   : > { %v620_v54 = vsel %vm619_vm8, %v1696_v40, %v616_v52 }
 0x12d   : > { %v621_v55 = vmul.f32 %v620_v54, %v604_v18 }
 0x12f   : > { %v625_v57 = vmul.f32 %v1682_v53, %v621_v55 }
 0x131   : > { %v629_v58 = vadd.f32 %v1683_v56, %v625_v57 }
 0x133   : > { %1600 = vmatmul.msk.f32.vlgmr.msra.gmra.mxu0 %vm632_vm0, %v629_v58 }
 0x1a8   : > { %v722_v60 = vpop.f32.mrf.mxu1 }
 0x1a9   : > { %v1999_v61 = vadd.f32 %v1684_v59, %v722_v60 }
 0x1ab   : > { %792 = vrot.lane.b32.xlu2 %v1999_v61, %s1784_s24  ;;  %798 = vrot.lane.b32.xlu0 %v1999_v61, %s1785_s25  ;;  %v803_v8 = vrot.slane %v1999_v61, 4 }
 0x1b0   : > { %v691_v63 = vpop.f32.mrf.mxu0 }
 0x1b1   : > { %v692_v0 = vadd.f32 %v1685_v62, %v691_v63 }
 0x1b3   : > { %795 = vrot.lane.b32.xlu2 %v1999_v61, %s1786_s20  ;;  %729 = vrot.lane.b32.xlu1 %v692_v0, %s1786_s20 }
 0x1bb   : > { %732 = vrot.lane.b32.xlu2 %v692_v0, %s1785_s25  ;;  %s1618_s25 = sshll.u32 %s1909_s0, 2  ;;  %s1507_s0 = scalar_lea.sflag [#allocation3], %s577_s23 }
 0x1bc   : > { %s1517_s20 = scalar_lea.hbm %s2336_s18, %s1618_s25 }
 0x1bd   : > { %s1521_s22 = sshll.u32 %s1517_s20, 4  ;;  %s1522_s22 = int_to_ptr.hbm [resolvable:$true] %s1521_s22 }
 0x1be   : > { %s1733_s3 = sshra.s32 %s1522_s22, 4  ;;  %s1734_s3 = int_to_ptr.hbm [resolvable:$true] %s1733_s3 }
 0x1bf   : > { %s1735_s25 = scalar_lea.hbm %s1734_s3, 4  ;;  %p1740_p0 = scmp.lt.s32.totalorder %s1734_s3, %s2336_s18 }
 0x1c0   : > { %p1736_p11 = scmp.ne.s32.totalorder %s1734_s3, %s1735_s25 }
 0x1c2   : > { %p1737_p12 = pnand %p1736_p11, %p1926_p5 }
 0x1c3   : > { %726 = vrot.lane.b32.xlu2 %v692_v0, %s1784_s24  ;;  %s1597_s24 = sshll.u32 %s577_s23, 2 }
 0x1c4   : > { %p1738_p13 = pneg %p1737_p12 }
 0x205   : > { %v2007_v1 = vpop.permute.xlu2 %792 }
 0x206   : > { %v815_v16 = vrot.slane %v2007_v1, 4 }
 0x20d   : > { %v2009_v3 = vpop.permute.xlu2 %795 }
 0x20e   : > { %v801_v7 = vrot.slane %v2009_v3, 4  ;;  %v804_v11 = vsel %vm736_vm9, %v2009_v3, %v803_v8 }
 0x20f   : > { %v812_v15 = vperm.slane %v804_v11, %v2013_v9 }
 0x210   : > { %v802_v12 = vsel %vm736_vm9, %v801_v7, %v1999_v61 }
 0x211   : > { %v808_v17 = vperm.slane %v802_v12, %v2013_v9  ;;  %v839_v22 = vrot.slane %v812_v15, 4 }
 0x213   : > { %v827_v27 = vrot.slane %v808_v17, 4 }
 0x215   : > { %v733_v6 = vpop.permute.xlu2 %732 }
 0x216   : > { %v742_v25 = vrot.slane %v733_v6, 4 }
 0x21d   : > { %v2022_v18 = vpop.permute.xlu0 %798  ;;  %v727_v23 = vpop.permute.xlu2 %726 }
 0x21e   : > { %v813_v20 = vrot.slane %v2022_v18, 4  ;;  %v816_v21 = vsel %vm736_vm9, %v2022_v18, %v815_v16  ;;  %v743_v31 = vsel %vm736_vm9, %v742_v25, %v727_v23 }
 0x21f   : > { %v824_v24 = vperm.slane %v816_v21, %v2013_v9  ;;  %v747_v39 = vperm.slane %v743_v31, %v2013_v9 }
 0x220   : > { %v814_v26 = vsel %vm736_vm9, %v813_v20, %v2007_v1 }
 0x221   : > { %v820_v28 = vperm.slane %v814_v26, %v2013_v9  ;;  %v837_v29 = vrot.slane %v824_v24, 4  ;;  %v840_v30 = vsel %vm736_vm9, %v824_v24, %v839_v22  ;;  %v748_v57 = vrot.slane %v747_v39, 4 }
 0x222   : > { %v848_v32 = vperm.slane %v840_v30, %v2024_v19 }
 0x223   : > { %v825_v33 = vrot.slane %v820_v28, 4  ;;  %v828_v34 = vsel %vm736_vm9, %v820_v28, %v827_v27  ;;  %v838_v35 = vsel %vm736_vm9, %v837_v29, %v812_v15 }
 0x224   : > { %v836_v36 = vperm.slane %v828_v34, %v2024_v19  ;;  %v844_v37 = vperm.slane %v838_v35, %v2024_v19  ;;  %v855_v38 = vrot.slane %v848_v32, 4 }
 0x225   : > { %v826_v40 = vsel %vm736_vm9, %v825_v33, %v808_v17  ;;  %v730_v41 = vpop.permute.xlu1 %729 }
 0x226   : > { %v832_v42 = vperm.slane %v826_v40, %v2024_v19  ;;  %v851_v43 = vrot.slane %v836_v36, 4  ;;  %v853_v44 = vrot.slane %v844_v37, 4  ;;  %v856_v45 = vsel %vm736_vm9, 0.0, %v855_v38 }
 0x227   : > { %v868_v46 = vsel %vm736_vm9, %v855_v38, %v844_v37  ;;  %v873_v47 = vrot.slane %v856_v45, 4  ;;  %v735_v48 = vrot.slane %v730_v41, 4 }
 0x228   : > { %v852_v49 = vsel %vm736_vm9, 0.0, %v851_v43  ;;  %v854_v50 = vsel %vm736_vm9, 0.0, %v853_v44  ;;  %v849_v51 = vrot.slane %v832_v42, 4  ;;  %v857_v52 = vsel %vm736_vm9, %v851_v43, %v832_v42 }
 0x229   : > { %v737_v53 = vsel %vm736_vm9, %v735_v48, %v692_v0  ;;  %v861_v54 = vperm.slane %v857_v52, %v2013_v9  ;;  %v862_v55 = vrot.slane %v852_v49, 4  ;;  %v872_v56 = vperm.slane %v868_v46, %v2013_v9 }
 0x22a   : > { %v741_v58 = vperm.slane %v737_v53, %v2013_v9  ;;  %v850_v59 = vsel %vm736_vm9, 0.0, %v849_v51  ;;  %v874_v60 = vsel %vm736_vm9, %v873_v47, %v854_v50 }
 0x22b   : > { %v863_v62 = vsel %vm736_vm9, %v862_v55, %v850_v59  ;;  %v878_v63 = vperm.slane %v874_v60, %v2013_v9  ;;  %v881_v4 = vrot.slane %v861_v54, 4  ;;  %v893_v5 = vrot.slane %v872_v56, 4 }
 0x22c   : > { %v749_v0 = vsel %vm736_vm9, %v748_v57, %v741_v58  ;;  %v750_v6 = vrot.slane %v741_v58, 4  ;;  %v867_v7 = vperm.slane %v863_v62, %v2013_v9  ;;  %v1675_v60 = vpack.i.bf16 %v2007_v1, %v2022_v18 }
 0x22d   : > { %v755_v8 = vperm.slane %v749_v0, %v2024_v19  ;;  %v894_v11 = vsel %vm736_vm9, %v878_v63, %v893_v5  ;;  %v891_v12 = vrot.slane %v878_v63, 4  ;;  %v1670_v62 = vpack.i.bf16 %v1999_v61, %v2009_v3 }
 0x22e   : > { %v751_v13 = vsel %vm736_vm9, %v747_v39, %v750_v6  ;;  %v882_v14 = vsel %vm736_vm9, %v867_v7, %v881_v4  ;;  %v902_v15 = vperm.slane %v894_v11, %v2024_v19  ;;  %v879_v16 = vrot.slane %v867_v7, 4 }
 0x22f   : > { %v759_v17 = vperm.slane %v751_v13, %v2024_v19  ;;  %v890_v20 = vperm.slane %v882_v14, %v2024_v19  ;;  %v892_v21 = vsel %vm736_vm9, %v891_v12, %v872_v56  ;;  %v760_v25 = vrot.slane %v755_v8, 4 }
 0x230   : > { %v907_v22 = vrot.slane %v902_v15, 4  ;;  %v880_v23 = vsel %vm736_vm9, %v879_v16, %v861_v54  ;;  %v898_v24 = vperm.slane %v892_v21, %v2024_v19 }
 0x231   : > { %v762_v26 = vrot.slane %v759_v17, 4  ;;  %v886_v27 = vperm.slane %v880_v23, %v2024_v19  ;;  %v761_v36 = vsel %vm736_vm9, 0.0, %v760_v25  ;;  %v909_v43 = vrot.slane %v890_v20, 4 }
 0x232   : > { %v908_v28 = vsel %vm736_vm9, %v907_v22, %v890_v20  ;;  %v903_v29 = vrot.slane %v898_v24, 4 }
 0x233   : > { %v763_v30 = vsel %vm736_vm9, 0.0, %v762_v26  ;;  %1606 = vmatpush.xpose.msk.msrb.mxu0 %vm1033_vm10, %v908_v28  ;;  %v905_v31 = vrot.slane %v886_v27, 4  ;;  %v764_v32 = vsel %vm736_vm9, %v762_v26, %v755_v8  ;;  %v910_v47 = vsel %vm736_vm9, %v902_v15, %v909_v43 }
 0x234   : > { %v769_v33 = vrot.slane %v763_v30, 4  ;;  %v904_v34 = vsel %vm736_vm9, %v903_v29, %v886_v27  ;;  %v768_v35 = vperm.slane %v764_v32, %v2013_v9 }
 0x235   : > { %1602 = vmatpush.xpose.msk.msra.mxu3 %vm1033_vm10, %v904_v34  ;;  %v906_v37 = vsel %vm736_vm9, %v898_v24, %v905_v31 }
 0x236   : > { %v770_v38 = vsel %vm736_vm9, %v769_v33, %v761_v36  ;;  %v777_v39 = vrot.slane %v768_v35, 4 }
 0x237   : > { %v774_v40 = vperm.slane %v770_v38, %v2013_v9 }
 0x239   : > { %1604 = vmatpush.xpose.msk.msrb.mxu3 %vm1033_vm10, %v906_v37  ;;  %v778_v41 = vsel %vm736_vm9, %v774_v40, %v777_v39  ;;  %v775_v42 = vrot.slane %v774_v40, 4 }
 0x23a   : > { %v786_v44 = vperm.slane %v778_v41, %v2024_v19 }
 0x23b   : > { %v776_v45 = vsel %vm736_vm9, %v775_v42, %v768_v35 }
 0x23c   : > { %1607 = vmatmul.msk.f32.vlgmr.msrb.gmra.mxu0 %vm1033_vm10, %v786_v44  ;;  %v782_v46 = vperm.slane %v776_v45, %v2024_v19  ;;  %v789_v50 = vrot.slane %v786_v44, 4 }
 0x23e   : > { %1603 = vmatmul.msk.f32.vlgmr.msra.gmra.mxu3 %vm1033_vm10, %v782_v46  ;;  %v787_v48 = vrot.slane %v782_v46, 4  ;;  %v790_v51 = vsel %vm736_vm9, 0.0, %v789_v50 }
 0x23f   : > { %1608 = vmatpush.xpose.msk.msra.mxu3 %vm1033_vm10, %v910_v47 }
 0x240   : > { %v788_v49 = vsel %vm736_vm9, 0.0, %v787_v48 }
 0x246   : > { %1605 = vmatmul.msk.f32.vlgmr.msrb.gmra.mxu3 %vm1033_vm10, %v788_v49 }
 0x24e   : > { %1609 = vmatmul.msk.f32.vlgmr.msra.gmra.mxu3 %vm1033_vm10, %v790_v51 }
 0x2b9   : > { %v1109_v52 = vpop.f32.mrf.mxu0 }
 0x2ba   : > { %v1145_v53 = vsel %vm1138_vm11, %v1109_v52, -inf }
 0x2bb   : > { %1146 = vmax.xlane.f32.xlu1 %v1145_v53 }
 0x2c1   : > { %v1057_v54 = vpop.f32.mrf.mxu3 }
 0x2c2   : > { %v1139_v55 = vsel %vm1138_vm11, %v1057_v54, -inf }
 0x2c3   : > { %1140 = vmax.xlane.f32.xlu2 %v1139_v55 }
 0x2c9   : > { %v1083_v56 = vpop.f32.mrf.mxu3 }
 0x2ca   : > { %v1142_v57 = vsel %vm1138_vm11, %v1083_v56, -inf }
 0x2cb   : > { %1143 = vmax.xlane.f32.xlu2 %v1142_v57 }
 0x2d1   : > { %v1135_v58 = vpop.f32.mrf.mxu3 }
 0x2d2   : > { %v1148_v59 = vsel %vm1138_vm11, %v1135_v58, -inf }
 0x2d3   : > { %1149 = vmax.xlane.f32.xlu0 %v1148_v59 }
 0x2e3   : > { %1676 = vrot.lane.b32.xlu2 %v1675_v60, %s1789_s21 }
 0x2e7   : > { %1671 = vrot.lane.b32.xlu0 %v1670_v62, %s1789_s21 }
 0x32e   : > { %v1147_v63 = vpop.xlane.xlu1 %1146 }
 0x32f   : > { %v1153_v4 = vsub.f32 %v1109_v52, %v1147_v63 }
 0x331   : > { %v1159_v5 = vmul.f32 1.442695, %v1153_v4 }
 0x333   : > { %1697 = vpow2.f32 %v1159_v5 }
 0x336   : > { %v1141_v0 = vpop.xlane.xlu2 %1140 }
 0x337   : > { %v1151_v61 = vsub.f32 %v1057_v54, %v1141_v0 }
 0x339   : > { %v2101_v6 = vpop.eup %1697  ;;  %v1155_v15 = vmul.f32 1.442695, %v1151_v61 }
 0x33a   : > { %v1169_v7 = vsel %vm1138_vm11, %v2101_v6, 0.0 }
 0x33b   : > { %1170 = vadd.xlane.f32.xlu0 %v1169_v7 }
 0x33e   : > { %v1144_v8 = vpop.xlane.xlu2 %1143 }
 0x33f   : > { %v1152_v11 = vsub.f32 %v1083_v56, %v1144_v8 }
 0x341   : > { %v1157_v1 = vmul.f32 1.442695, %v1152_v11 }
 0x343   : > { %1699 = vpow2.f32 %v1157_v1 }
 0x346   : > { %v1150_v18 = vpop.xlane.xlu0 %1149  ;;  %v1677_v16 = vpop.permute.xlu2 %1676 }
 0x347   : > { %v1154_v12 = vsub.f32 %v1135_v58, %v1150_v18  ;;  %v1679_v17 = vunpack.i.h.bf16 %v1677_v16  ;;  %v1678_v20 = vunpack.i.l.bf16 %v1677_v16 }
 0x349   : > { %v2105_v13 = vpop.eup %1699  ;;  %v1161_v3 = vmul.f32 1.442695, %v1154_v12  ;;  %v937_v23 = vrot.slane %v1679_v17, 4  ;;  %v935_v24 = vrot.slane %v1678_v20, 4 }
 0x34a   : > { %v1166_v14 = vsel %vm1138_vm11, %v2105_v13, 0.0 }
 0x34b   : > { %1701 = vpow2.f32 %v1161_v3  ;;  %1167 = vadd.xlane.f32.xlu1 %v1166_v14  ;;  %v936_v26 = vsel %vm736_vm9, %v935_v24, %v1679_v17  ;;  %v938_v27 = vsel %vm736_vm9, %v1678_v20, %v937_v23 }
 0x34c   : > { %1703 = vpow2.f32 %v1155_v15  ;;  %v942_v32 = vperm.slane %v936_v26, %v2013_v9  ;;  %v946_v33 = vperm.slane %v938_v27, %v2013_v9 }
 0x34e   : > { %v947_v38 = vrot.slane %v942_v32, 4  ;;  %v959_v39 = vrot.slane %v946_v33, 4 }
 0x351   : > { %v2109_v21 = vpop.eup %1701 }
 0x352   : > { %v1172_v22 = vsel %vm1138_vm11, %v2109_v21, 0.0  ;;  %v2113_v25 = vpop.eup %1703 }
 0x353   : > { %1173 = vadd.xlane.f32.xlu1 %v1172_v22  ;;  %v1163_v31 = vsel %vm1138_vm11, %v2113_v25, 0.0 }
 0x359   : > { %v1672_v28 = vpop.permute.xlu0 %1671 }
 0x35a   : > { %v1674_v29 = vunpack.i.h.bf16 %v1672_v28  ;;  %v1673_v30 = vunpack.i.l.bf16 %v1672_v28 }
 0x35b   : > { %1164 = vadd.xlane.f32.xlu1 %v1163_v31 }
 0x35c   : > { %v925_v34 = vrot.slane %v1674_v29, 4  ;;  %v923_v35 = vrot.slane %v1673_v30, 4 }
 0x35e   : > { %v924_v36 = vsel %vm736_vm9, %v923_v35, %v1674_v29  ;;  %v926_v37 = vsel %vm736_vm9, %v1673_v30, %v925_v34 }
 0x35f   : > { %v930_v40 = vperm.slane %v924_v36, %v2013_v9  ;;  %v934_v41 = vperm.slane %v926_v37, %v2013_v9 }
 0x361   : > { %v948_v42 = vsel %vm736_vm9, %v947_v38, %v930_v40  ;;  %v949_v43 = vrot.slane %v930_v40, 4  ;;  %v960_v44 = vsel %vm736_vm9, %v959_v39, %v934_v41  ;;  %v961_v45 = vrot.slane %v934_v41, 4 }
 0x362   : > { %v954_v46 = vperm.slane %v948_v42, %v2024_v19  ;;  %v966_v47 = vperm.slane %v960_v44, %v2024_v19 }
 0x363   : > { %v950_v48 = vsel %vm736_vm9, %v942_v32, %v949_v43  ;;  %v962_v49 = vsel %vm736_vm9, %v946_v33, %v961_v45 }
 0x364   : > { %v958_v50 = vperm.slane %v950_v48, %v2024_v19  ;;  %v970_v51 = vperm.slane %v962_v49, %v2024_v19  ;;  %v971_v52 = vrot.slane %v954_v46, 4  ;;  %v975_v54 = vrot.slane %v966_v47, 4 }
 0x366   : > { %v973_v53 = vrot.slane %v958_v50, 4  ;;  %v977_v55 = vrot.slane %v970_v51, 4  ;;  %v972_v5 = vsel %vm736_vm9, 0.0, %v971_v52  ;;  %v976_v0 = vsel %vm736_vm9, 0.0, %v975_v54 }
 0x368   : > { %v974_v56 = vsel %vm736_vm9, 0.0, %v973_v53  ;;  %v978_v57 = vsel %vm736_vm9, 0.0, %v977_v55  ;;  %v979_v58 = vsel %vm736_vm9, %v973_v53, %v954_v46  ;;  %v990_v59 = vsel %vm736_vm9, %v977_v55, %v966_v47 }
 0x369   : > { %v984_v60 = vrot.slane %v974_v56, 4  ;;  %v995_v62 = vrot.slane %v978_v57, 4  ;;  %v983_v63 = vperm.slane %v979_v58, %v2013_v9  ;;  %v994_v4 = vperm.slane %v990_v59, %v2013_v9 }
 0x36b   : > { %v985_v7 = vsel %vm736_vm9, %v984_v60, %v972_v5  ;;  %v996_v8 = vsel %vm736_vm9, %v995_v62, %v976_v0  ;;  %v1003_v11 = vrot.slane %v983_v63, 4  ;;  %v1015_v1 = vrot.slane %v994_v4, 4 }
 0x36c   : > { %v989_v18 = vperm.slane %v985_v7, %v2013_v9  ;;  %v1000_v12 = vperm.slane %v996_v8, %v2013_v9 }
 0x36e   : > { %v1004_v61 = vsel %vm736_vm9, %v989_v18, %v1003_v11  ;;  %v1016_v3 = vsel %vm736_vm9, %v1000_v12, %v1015_v1  ;;  %v1001_v14 = vrot.slane %v989_v18, 4  ;;  %v1013_v15 = vrot.slane %v1000_v12, 4 }
 0x36f   : > { %v1012_v16 = vperm.slane %v1004_v61, %v2024_v19  ;;  %v1024_v17 = vperm.slane %v1016_v3, %v2024_v19 }
 0x370   : > { %v1002_v20 = vsel %vm736_vm9, %v1001_v14, %v983_v63  ;;  %v1014_v22 = vsel %vm736_vm9, %v1013_v15, %v994_v4 }
 0x371   : > { %v1031_v23 = vrot.slane %v1012_v16, 4  ;;  %v1008_v24 = vperm.slane %v1002_v20, %v2024_v19  ;;  %v1020_v26 = vperm.slane %v1014_v22, %v2024_v19  ;;  %v1029_v27 = vrot.slane %v1024_v17, 4  ;;  %v1347_v20 = vld [vmem:[%s2328_s10] sm:$0xff] }
 0x373   : > { %v1032_v28 = vsel %vm736_vm9, %v1024_v17, %v1031_v23  ;;  %v1025_v29 = vrot.slane %v1020_v26, 4  ;;  %v1027_v30 = vrot.slane %v1008_v24, 4  ;;  %v1030_v33 = vsel %vm736_vm9, %v1029_v27, %v1012_v16  ;;  %v1349_v17 = vld [vmem:[%s2328_s10 + $0x10] sm:$0xff] }
 0x374   : > { %1270 = vmatpush.msrb.mxu3 %v1032_v28 }
 0x375   : > { %v1026_v31 = vsel %vm736_vm9, %v1025_v29, %v1008_v24  ;;  %v1028_v32 = vsel %vm736_vm9, %v1020_v26, %v1027_v30  ;;  %v1686_v29 = vld [vmem:[%s2329_s11] ss:$0 sm:$0xff] }
 0x376   : > { %1201 = vmatpush.msra.mxu0 %v1026_v31  ;;  %1224 = vmatpush.msrb.mxu1 %v1028_v32 }
 0x378   : > { %1247 = vmatpush.msra.mxu1 %v1030_v33 }
 0x3ae   : > { %v1171_v35 = vpop.xlane.xlu0 %1170 }
 0x3be   : > { %v1168_v34 = vpop.xlane.xlu1 %1167 }
 0x3bf   : > { %1705 = vrcp.f32 %v1168_v34 }
 0x3c0   : > { %1707 = vrcp.f32 %v1171_v35 }
 0x3c5   : > { %v1706_v36 = vpop.eup %1705 }
 0x3c6   : > { %v1174_v37 = vpop.xlane.xlu1 %1173  ;;  %v1180_v38 = vmul.f32 %v1706_v36, %v2105_v13  ;;  %v1708_v39 = vpop.eup %1707 }
 0x3c7   : > { %1709 = vrcp.f32 %v1174_v37  ;;  %v1181_v41 = vmul.f32 %v1708_v39, %v2101_v6  ;;  %v1414_v39 = vld [vmem:[%s2332_s14 + $0x18] sm:$0xff] }
 0x3c8   : > { %1611 = vmatmul.msk.f32.vlgmr.msrb.gmra.mxu1 %vm1033_vm10, %v1180_v38 }
 0x3c9   : > { %1434 = vmatpush.msrb.mxu1 %v1414_v39 }
 0x3cd   : > { %v1710_v40 = vpop.eup %1709 }
 0x3ce   : > { %v1182_v42 = vmul.f32 %v1710_v40, %v2109_v21  ;;  %v1165_v43 = vpop.xlane.xlu1 %1164  ;;  %v1412_v40 = vld [vmem:[%s2332_s14 + $0x8] sm:$0xff] }
 0x3cf   : > { %1711 = vrcp.f32 %v1165_v43 }
 0x3d0   : > { %1612 = vmatmul.msk.f32.vlgmr.msra.gmra.mxu1 %vm1033_vm10, %v1181_v41  ;;  %1613 = vmatmul.msk.f32.vlgmr.msrb.gmra.mxu3 %vm1033_vm10, %v1182_v42  ;;  %v1411_v41 = vld [vmem:[%s2332_s14] sm:$0xff] }
 0x3d5   : > { %v1712_v44 = vpop.eup %1711 }
 0x3d6   : > { %v1179_v45 = vmul.f32 %v1712_v44, %v2113_v25 }
 0x3d8   : > { %1610 = vmatmul.msk.f32.vlgmr.msra.gmra.mxu0 %vm1033_vm10, %v1179_v45 }
 0x445   : > { %v1226_v13 = vpop.f32.mrf.mxu1 }
 0x44d   : > { %v1249_v46 = vpop.f32.mrf.mxu1 }
 0x44e   : > { %v1275_v48 = vrot.slane %v1249_v46, 4 }
 0x453   : > { %v1272_v47 = vpop.f32.mrf.mxu3 }
 0x454   : > { %v1281_v49 = vrot.slane %v1272_v47, 4 }
 0x455   : > { %v1203_v50 = vpop.f32.mrf.mxu0 }
 0x456   : > { %v1282_v6 = vsel %vm736_vm9, %v1281_v49, %v1226_v13  ;;  %v1276_v21 = vsel %vm736_vm9, %v1275_v48, %v1203_v50  ;;  %v1687_v50 = vld [vmem:[%s2330_s12] ss:$0 sm:$0xff] }
 0x457   : > { %v1286_v51 = vperm.slane %v1282_v6, %v2013_v9  ;;  %v1280_v52 = vperm.slane %v1276_v21, %v2013_v9 }
 0x459   : > { %v1287_v53 = vrot.slane %v1286_v51, 4  ;;  %v1289_v54 = vrot.slane %v1280_v52, 4 }
 0x45b   : > { %v1288_v25 = vsel %vm736_vm9, %v1287_v53, %v1280_v52  ;;  %v1290_v55 = vsel %vm736_vm9, %v1286_v51, %v1289_v54  ;;  %v1478_v53 = vld [vmem:[%s2334_s16 + $0x78] sm:$0xff]  ;;  %v1477_v54 = vld [vmem:[%s2334_s16 + $0x70] sm:$0xff] }
 0x45c   : > { %v1294_v56 = vperm.slane %v1288_v25, %v2024_v19  ;;  %v1298_v57 = vperm.slane %v1290_v55, %v2024_v19  ;;  %1479 = vmatpush.msra.mxu2 %v1478_v53  ;;  %v1476_v25 = vld [vmem:[%s2334_s16 + $0x68] sm:$0xff]  ;;  %v1475_v55 = vld [vmem:[%s2334_s16 + $0x60] sm:$0xff] }
 0x45e   : > { %v1299_v58 = vrot.slane %v1294_v56, 4  ;;  %v1301_v59 = vrot.slane %v1298_v57, 4  ;;  %1480 = vmatpush.msra.mxu2 %v1477_v54  ;;  %v1473_v57 = vld [vmem:[%s2334_s16 + $0x50] sm:$0xff] }
 0x460   : > { %v1302_v60 = vsel %vm736_vm9, 0.0, %v1301_v59  ;;  %v1303_v62 = vsel %vm736_vm9, %v1301_v59, %v1294_v56  ;;  %v1300_v5 = vsel %vm736_vm9, 0.0, %v1299_v58  ;;  %1481 = vmatpush.msra.mxu2 %v1476_v25  ;;  %v1474_v56 = vld [vmem:[%s2334_s16 + $0x58] sm:$0xff]  ;;  %v1472_v58 = vld [vmem:[%s2334_s16 + $0x48] sm:$0xff]  ;;  %v1471_v59 = vld [vmem:[%s2334_s16 + $0x40] sm:$0xff] }
 0x461   : > { %v1308_v63 = vrot.slane %v1302_v60, 4  ;;  %v1307_v4 = vperm.slane %v1303_v62, %v2013_v9  ;;  %v1470_v60 = vld [vmem:[%s2334_s16 + $0x38] sm:$0xff]  ;;  %v1469_v62 = vld [vmem:[%s2334_s16 + $0x30] sm:$0xff] }
 0x462   : > { %1482 = vmatpush.msra.mxu2 %v1475_v55 }
 0x463   : > { %v1309_v0 = vsel %vm736_vm9, %v1308_v63, %v1300_v5  ;;  %v1316_v7 = vrot.slane %v1307_v4, 4  ;;  %v1468_v63 = vld [vmem:[%s2334_s16 + $0x28] sm:$0xff]  ;;  %v1466_v5 = vld [vmem:[%s2334_s16 + $0x18] sm:$0xff] }
 0x464   : > { %v1313_v8 = vperm.slane %v1309_v0, %v2013_v9  ;;  %v1350_v9 = vld [vmem:[%s2328_s10 + $0x18] sm:$0xff]  ;;  %1483 = vmatpush.msra.mxu2 %v1474_v56  ;;  %v1465_v0 = vld [vmem:[%s2334_s16 + $0x10] sm:$0xff] }
 0x465   : > { %1370 = vmatpush.msrb.mxu0 %v1350_v9 }
 0x466   : > { %v1317_v11 = vsel %vm736_vm9, %v1313_v8, %v1316_v7  ;;  %v1314_v1 = vrot.slane %v1313_v8, 4  ;;  %1484 = vmatpush.msra.mxu2 %v1473_v57  ;;  %v1689_v7 = vld [vmem:[%s2333_s15] ss:$0 sm:$0xff]  ;;  %v1464_v8 = vld [vmem:[%s2334_s16 + $0x8] sm:$0xff] }
 0x467   : > { %v1325_v18 = vperm.slane %v1317_v11, %v2024_v19  ;;  %1371 = vmatpush.msrb.mxu0 %v1349_v17 }
 0x468   : > { %v1315_v12 = vsel %vm736_vm9, %v1314_v1, %v1307_v4  ;;  %1485 = vmatpush.msra.mxu2 %v1472_v58  ;;  %v1467_v4 = vld [vmem:[%s2334_s16 + $0x20] sm:$0xff] }
 0x469   : > { %1335 = vrot.lane.b32.xlu1 %v1325_v18, %s1790_s27  ;;  %v1321_v61 = vperm.slane %v1315_v12, %v2024_v19  ;;  %v1328_v15 = vrot.slane %v1325_v18, 4  ;;  %v1348_v19 = vld [vmem:[%s2328_s10 + $0x8] sm:$0xff]  ;;  %v1463_v1 = vld [vmem:[%s2334_s16] sm:$0xff] }
 0x46a   : > { %1372 = vmatpush.msrb.mxu0 %v1348_v19  ;;  %1486 = vmatpush.msra.mxu2 %v1471_v59 }
 0x46b   : > { %v1326_v3 = vrot.slane %v1321_v61, 4  ;;  %v1329_v16 = vsel %vm736_vm9, 0.0, %v1328_v15 }
 0x46c   : > { %1373 = vmatpush.msrb.mxu0 %v1347_v20  ;;  %1487 = vmatpush.msra.mxu2 %v1470_v60 }
 0x46d   : > { %v1327_v14 = vsel %vm736_vm9, 0.0, %v1326_v3 }
 0x46e   : > { %1331 = vrot.lane.b32.xlu2 %v1327_v14, %s1791_s29  ;;  %1488 = vmatpush.msra.mxu2 %v1469_v62  ;;  %s579_s29 = scalar_lea.vmem [#allocation2], %s1597_s24  ;;  %s1739_s24 = scalar_lea.hbm %s2336_s18, 8 }
 0x46f   : > { %p1741_p1 = scmp.lt.s32.totalorder %s1739_s24, %s1735_s25 }
 0x470   : > { %1489 = vmatpush.msra.mxu2 %v1468_v63 }
 0x471   : > { %p1742_p2 = por %p1741_p1, %p1740_p0 }
 0x472   : > { %1490 = vmatpush.msra.mxu2 %v1467_v4 }
 0x473   : > { %p1743_p3 = pnand %p1742_p2, %p1738_p13 }
 0x474   : > { %1491 = vmatpush.msra.mxu2 %v1466_v5 }
 0x476   : > { %1339 = vrot.lane.b32.xlu2 %v1329_v16, %s1792_s1  ;;  %1492 = vmatpush.msra.mxu2 %v1465_v0  ;;  %s1519_s1 = sshll.u32 %s579_s29, 4  ;;  %s1520_s1 = int_to_ptr.vmem [resolvable:$true] %s1519_s1 }
 0x478   : > { %1493 = vmatpush.msra.mxu2 %v1464_v8 }
 0x47a   : > { %1494 = vmatpush.msra.mxu2 %v1463_v1 }
 0x4c8   : > { %v1332_v22 = vpop.permute.xlu2 %1331 }
 0x4c9   : > { %v1342_v23 = vsel %vm1033_vm10, %v1321_v61, %v1332_v22 }
 0x4d0   : > { %v1340_v26 = vpop.permute.xlu2 %1339 }
 0x4db   : > { %v1336_v24 = vpop.permute.xlu1 %1335 }
 0x4dc   : > { %v1344_v27 = vsel %vm1343_vm12, %v1342_v23, %v1336_v24 }
 0x4dd   : > { %v1346_v28 = vsel %vm1345_vm13, %v1344_v27, %v1340_v26 }
 0x4de   : > { %1614 = vmatmul.msk.f32.vlgmr.msrb.gmra.mxu0 %vm632_vm0, %v1346_v28  ;;  %v1690_v28 = vld [vmem:[%s2335_s17] ss:$0 sm:$0xff] }
 0x55b   : > { %v1375_v30 = vpop.f32.mrf.mxu0 }
 0x55c   : > { %v1376_v31 = vadd.f32 %v1686_v29, %v1375_v30 }
 0x55e   : > { %v2203_v32 = vadd.f32 %v1376_v31, %v1945_v2  ;;  %v1413_v2 = vld [vmem:[%s2332_s14 + $0x10] sm:$0xff] }
 0x55f   : > { %1435 = vmatpush.msrb.mxu1 %v1413_v2 }
 0x560   : > { %v1381_v33 = vsel %vm592_vm1, %v2203_v32, 0.0 }
 0x561   : > { %1382 = vadd.xlane.f32.xlu2 %v1381_v33  ;;  %1436 = vmatpush.msrb.mxu1 %v1412_v40 }
 0x563   : > { %1437 = vmatpush.msrb.mxu1 %v1411_v41 }
 0x5d4   : > { %v1383_v34 = vpop.xlane.xlu2 %1382 }
 0x5d5   : > { %v1384_v35 = vmul.f32 %v1383_v34, %v1949_v10 }
 0x5d7   : > { %v1385_v36 = vsub.f32 %v2203_v32, %v1384_v35 }
 0x5d9   : > { %v1386_v37 = vmul.f32 %v1385_v36, %v1385_v36 }
 0x5db   : > { %v1387_v38 = vsel %vm592_vm1, %v1386_v37, 0.0 }
 0x5dc   : > { %1388 = vadd.xlane.f32.xlu1 %v1387_v38 }
 0x64f   : > { %v1389_v42 = vpop.xlane.xlu1 %1388 }
 0x650   : > { %v1390_v43 = vmul.f32 %v1389_v42, %v1949_v10  ;;  %v1688_v10 = vld [vmem:[%s2331_s13] ss:$0 sm:$0xff] }
 0x652   : > { %v1391_v44 = vadd.f32 1e-05, %v1390_v43 }
 0x654   : > { %1713 = vrsqrt.f32 %v1391_v44  ;;  %vm1398_vm15 = vweird.f32 %v1391_v44 }
 0x65a   : > { %v1714_v45 = vpop.eup %1713 }
 0x65b   : > { %v1393_v13 = vmul.f32 %v1714_v45, %v1391_v44  ;;  %vm1399_vm14 = vweird.f32 %v1714_v45 }
 0x65c   : > { %vm1400_vm2 = vmor %vm1398_vm15, %vm1399_vm14 }
 0x65d   : > { %v1394_v46 = vmul.f32 %v1714_v45, %v1393_v13 }
 0x65f   : > { %v1395_v47 = vmul.f32 0.5, %v1394_v46 }
 0x661   : > { %v1396_v48 = vsub.f32 1.5, %v1395_v47 }
 0x663   : > { %v1397_v49 = vmul.f32 %v1714_v45, %v1396_v48 }
 0x665   : > { %v1401_v6 = vsel %vm1400_vm2, %v1714_v45, %v1397_v49 }
 0x666   : > { %v1402_v21 = vmul.f32 %v1401_v6, %v1385_v36 }
 0x668   : > { %v1406_v51 = vmul.f32 %v1687_v50, %v1402_v21 }
 0x66a   : > { %v1410_v52 = vadd.f32 %v1688_v10, %v1406_v51 }
 0x66c   : > { %1615 = vmatmul.msk.f32.vlgmr.msrb.gmra.mxu1 %vm632_vm0, %v1410_v52 }
 0x6e9   : > { %v1439_v11 = vpop.f32.mrf.mxu1 }
 0x6ea   : > { %v1440_v18 = vadd.f32 %v1689_v7, %v1439_v11 }
 0x6ec   : > { %v1616_v12 = vmul.f32 -1.702, %v1440_v18 }
 0x6ee   : > { %v1444_v61 = vmul.f32 1.442695, %v1616_v12 }
 0x6f0   : > { %1715 = vpow2.f32 %v1444_v61 }
 0x6f6   : > { %v1716_v3 = vpop.eup %1715 }
 0x6f7   : > { %v1446_v14 = vadd.f32 1.0, %v1716_v3 }
 0x6f9   : > { %1717 = vrcp.f32 %v1446_v14  ;;  %v1458_v17 = vand.u32 2147483648, %v1446_v14  ;;  %v1456_v20 = vand.u32 2147483647, %v1446_v14  ;;  %vm1452_vm3 = vweird.f32 %v1446_v14 }
 0x6fb   : > { %v1459_v23 = vor.u32 1.1754944e-38, %v1458_v17  ;;  %vm1457_vm5 = vcmp.eq.f32.partialorder %v1456_v20, 8.507059e+37 }
 0x6ff   : > { %v1718_v15 = vpop.eup %1717 }
 0x700   : > { %v1448_v16 = vmul.f32 %v1718_v15, %v1446_v14  ;;  %vm1453_vm0 = vweird.f32 %v1718_v15 }
 0x701   : > { %vm1454_vm4 = vmor %vm1452_vm3, %vm1453_vm0 }
 0x702   : > { %v1449_v9 = vsub.f32 1.0, %v1448_v16 }
 0x704   : > { %v1450_v19 = vmul.f32 %v1718_v15, %v1449_v9 }
 0x706   : > { %v1451_v22 = vadd.f32 %v1718_v15, %v1450_v19 }
 0x708   : > { %v1455_v24 = vsel %vm1454_vm4, %v1718_v15, %v1451_v22 }
 0x709   : > { %v1460_v26 = vsel %vm1457_vm5, %v1459_v23, %v1455_v24 }
 0x70a   : > { %v1462_v27 = vmul.f32 %v1460_v26, %v1440_v18 }
 0x70c   : > { %1495 = vmatmul.f32.vlgmr.msra.gmra.mxu2 %v1462_v27 }
 0x78f   : > { %v1496_v29 = vpop.f32.mrf.mxu2 }
 0x790   : > { %v1499_v30 = vadd.f32 %v1496_v29, %v2203_v32 }
 0x792   : > { %v1504_v31 = vadd.f32 %v1690_v28, %v1499_v30 }
 0x794   : > { %1505 = vst.msk [vmem:[%s579_s29] sm:$0xf] %vm592_vm1, %v1504_v31 }
 0x795   : > { %1746 = shalt.err (!%p1743_p3)
}
 0x796   : > { %1621 = dma.vmem_to_hbm [thread:$0]  (%p1926_p5), %s1520_s1, 64, %s1522_s22, %s1507_s0  }
 0x797 PF: > { %s2357_s23 = sld [smem:[#allocation5_spill]]  ;;  %p1627_p4 = scmp.ge.s32.totalorder %s1781_s30, 2 }
 0x799   : > { %p1624_p7 = pnand %p1627_p4, %p1930_p6 }
 0x79b   : > { %p1625_p8 = pneg %p1624_p7 }
 0x79d   : > { %s1533_s29 = sand.u32 1, %s2357_s23  }
 0x79e   : > { %s1534_s26 = scalar_lea.sflag [#allocation3], %s1533_s29 }
 0x79f   : > { %1764 = dma.done.wait (%p1625_p8), %s1534_s26, 64  }
 0x7a0   : > { %1766 = vsyncadd (%p1625_p8), %s1534_s26, 4294967232  ;;  %s2359_s30 = sld [smem:[#allocation7_spill]]  ;;  %s2362_s27 = smov %s1773_s28 }
 0x7a1   : > { %s2360_s3 = sld [smem:[#allocation6_spill]] }
 0x7a2   : > { %s2361_s29 = sld [smem:[#allocation8_spill]] }
 0x7a6   : > { %p28_p9 = scmp.ge.s32.totalorder %s2359_s30, 4  }
 0x7a7   : > { %s2363_s28 = smov %s2360_s3 }
 0x7a8   :  { %30 = sbr.rel (!%p28_p9) target bundleno = 8 (0x8), region = 130 }
 0x7ad   :  { %1540 = vsyncpa [#allocation3], 1 }
 0x7ae   :  { %1542 = vsyncpa [#allocation3 + $0x1], 1 }

// kernel: spatial_aggregation_transformer.2
= control target key start
LH: loop header
LB: loop body
LE: loop exit
PB: predicated region body
PF: predicated region fallthrough
CT: control target
= control target key end

     0   :  { %s2686_s0 = inlined_call_operand.vmem [shape: f32[2,4,32], index: 0, kind: input, shape index: {}]   ;;  %s2687_s1 = inlined_call_operand.vmem [shape: f32[2,8,32], index: 1, kind: input, shape index: {}]   ;;  %s2688_s2 = inlined_call_operand.vmem [shape: f32[1,32], index: 2, kind: input, shape index: {}]   ;;  %s2689_s3 = inlined_call_operand.vmem [shape: f32[1,32], index: 3, kind: input, shape index: {}]   ;;  %s2690_s4 = inlined_call_operand.hbm [shape: f32[1,32], index: 4, kind: input, shape index: {}]   ;;  %s2691_s5 = inlined_call_operand.hbm [shape: f32[1,32], index: 5, kind: input, shape index: {}]   ;;  %s2692_s6 = inlined_call_operand.vmem [shape: f32[32,32], index: 6, kind: input, shape index: {}]   ;;  %s2693_s7 = inlined_call_operand.hbm [shape: f32[1,32], index: 7, kind: input, shape index: {}]   ;;  %s2694_s8 = inlined_call_operand.vmem [shape: f32[32,64], index: 8, kind: input, shape index: {}]   ;;  %s2695_s9 = inlined_call_operand.hbm [shape: f32[1,64], index: 9, kind: input, shape index: {}]   ;;  %s2696_s10 = inlined_call_operand.vmem [shape: f32[32,32], index: 10, kind: input, shape index: {}]   ;;  %s2697_s11 = inlined_call_operand.hbm [shape: f32[1,32], index: 11, kind: input, shape index: {}]   ;;  %s2698_s12 = inlined_call_operand.vmem [shape: f32[1,32], index: 12, kind: input, shape index: {}]   ;;  %s2699_s13 = inlined_call_operand.vmem [shape: f32[1,32], index: 13, kind: input, shape index: {}]   ;;  %s2700_s14 = inlined_call_operand.vmem [shape: f32[32,128], index: 14, kind: input, shape index: {}]   ;;  %s2701_s15 = inlined_call_operand.hbm [shape: f32[1,128], index: 15, kind: input, shape index: {}]   ;;  %s2702_s16 = inlined_call_operand.vmem [shape: f32[128,32], index: 16, kind: input, shape index: {}]   ;;  %s2703_s17 = inlined_call_operand.hbm [shape: f32[1,32], index: 17, kind: input, shape index: {}]   ;;  %s2704_s18 = inlined_call_operand.vmem [shape: f32[2,4,32], index: 18, kind: output, shape index: {}]  }
   0x1   :  { %2705 = sst [smem:[#allocation17_spill]] %s2686_s0 }
   0x2   :  { %2706 = sst [smem:[#allocation18_spill]] %s2687_s1 }
   0x3   :  { %2707 = sst [smem:[#allocation19_spill]] %s2688_s2 }
   0x4   :  { %2708 = sst [smem:[#allocation20_spill]] %s2691_s5 }
   0x5   :  { %2709 = sst [smem:[#allocation21_spill]] %s2695_s9 }
   0x6   :  { %2710 = sst [smem:[#allocation22_spill]] %s2701_s15 }
   0x7   :  { %23 = vsyncpa [#allocation3], 0 }
   0x8   :  { %24 = vsyncpa [#allocation5], 0 }
   0x9   :  { %25 = vsyncpa [#allocation8], 0 }
   0xa   :  { %26 = vsyncpa [#allocation11], 0  ;;  %s2267_s27 = smov 0  }
   0xb LB: > { %s2711_s5 = sld [smem:[#allocation20_spill]]  ;;  %s2276_s0 = sadd.s32 4294967295, %s2153_s27   ;;  %s2153_s27 = sphi %s2267_s27, %s32_s27  }
   0xc   : > { %p1744_p0 = scmp.ge.s32.totalorder %s2153_s27, 1  ;;  %p451_p1 = scmp.lt.s32.totalorder %s2153_s27, 3 }
   0xd   : > { %p1833_p2 = scmp.eq.s32.totalorder %s2276_s0, 0  ;;  %s2155_s1 = smov [#allocation4]  }
   0xe   : > { %p2281_p3 = pnand %p1744_p0, %p451_p1  ;;  %s483_s20 = sshll.u32 %s2155_s1, 4  ;;  %s484_s20 = int_to_ptr.vmem [resolvable:$true] %s483_s20 }
   0xf   : > { %s2713_s9 = sld [smem:[#allocation21_spill]]  ;;  %s2156_s28 = smov [#allocation7]  }
  0x10   : > { %p1811_p4 = pneg %p2281_p3  ;;  %s2714_s15 = sld [smem:[#allocation22_spill]] }
  0x11   : > { %s481_s30 = sshll.u32 %s2711_s5, 4  ;;  %s513_s29 = sshll.u32 %s2156_s28, 4  ;;  %s482_s30 = int_to_ptr.hbm [resolvable:$true] %s481_s30  ;;  %s514_s29 = int_to_ptr.vmem [resolvable:$true] %s513_s29 }
  0x12   : > { %p2295_p5 = pnand %p1833_p2, %p1811_p4  ;;  %s2157_s1 = smov [#allocation10]  }
  0x13   : > { %s549_s21 = sshll.u32 %s2157_s1, 4  ;;  %s469_s24 = sshll.u32 %s2690_s4, 4  ;;  %s550_s21 = int_to_ptr.vmem [resolvable:$true] %s549_s21  ;;  %s470_s24 = int_to_ptr.hbm [resolvable:$true] %s469_s24 }
  0x14   : > { %1817 = dma.hbm_to_vmem [thread:$0]  (!%p2295_p5), %s482_s30, 16, %s484_s20, [#allocation5]  }
  0x15   : > { %s511_s2 = sshll.u32 %s2713_s9, 4  ;;  %s496_s9 = sshll.u32 %s2693_s7, 4  ;;  %s512_s2 = int_to_ptr.hbm [resolvable:$true] %s511_s2  ;;  %s497_s9 = int_to_ptr.hbm [resolvable:$true] %s496_s9 }
  0x16   : > { %s547_s25 = sshll.u32 %s2714_s15, 4  ;;  %s2158_s15 = smov [#allocation2]   ;;  %s548_s25 = int_to_ptr.hbm [resolvable:$true] %s547_s25 }
  0x17   : > { %1823 = dma.hbm_to_vmem [thread:$0]  (!%p2295_p5), %s512_s2, 16, %s514_s29, [#allocation8]  }
  0x18   : > { %1829 = dma.hbm_to_vmem [thread:$0]  (!%p2295_p5), %s548_s25, 16, %s550_s21, [#allocation11]  }
  0x19   : > { %s471_s30 = sshll.u32 %s2158_s15, 4  ;;  %s2159_s20 = smov [#allocation6]   ;;  %s472_s30 = int_to_ptr.vmem [resolvable:$true] %s471_s30 }
  0x1a   : > { %1814 = dma.hbm_to_vmem [thread:$0]  (!%p2295_p5), %s470_s24, 16, %s472_s30, [#allocation3]  }
  0x1b   : > { %s498_s2 = sshll.u32 %s2159_s20, 4  ;;  %s526_s22 = sshll.u32 %s2697_s11, 4  ;;  %s499_s2 = int_to_ptr.vmem [resolvable:$true] %s498_s2  ;;  %s527_s22 = int_to_ptr.hbm [resolvable:$true] %s526_s22 }
  0x1c   : > { %1820 = dma.hbm_to_vmem [thread:$0]  (!%p2295_p5), %s497_s9, 16, %s499_s2, [#allocation5]  }
  0x1d   : > { %s562_s21 = sshll.u32 %s2703_s17, 4  ;;  %s2160_s15 = smov [#allocation9]   ;;  %s563_s21 = int_to_ptr.hbm [resolvable:$true] %s562_s21 }
  0x1e   : > { %s528_s23 = sshll.u32 %s2160_s15, 4  ;;  %s2161_s24 = smov [#allocation12]   ;;  %s529_s23 = int_to_ptr.vmem [resolvable:$true] %s528_s23 }
  0x1f   : > { %1826 = dma.hbm_to_vmem [thread:$0]  (!%p2295_p5), %s527_s22, 16, %s529_s23, [#allocation8]  }
  0x20   : > { %s564_s28 = sshll.u32 %s2161_s24, 4  ;;  %591 = sbr.rel (%p2281_p3) target bundleno = 1962 (0x7aa), region = 92  ;;  %s565_s28 = int_to_ptr.vmem [resolvable:$true] %s564_s28 }
  0x21   : > { %1832 = dma.hbm_to_vmem [thread:$0]  (!%p2295_p5), %s563_s21, 16, %s565_s28, [#allocation11]  }
  0x25   : > { %2136 = dma.done.wait (%p1833_p2), [#allocation3], 16  }
  0x26   : > { %2138 = vsyncadd (%p1833_p2), [#allocation3], 4294967280 }
  0x27   : > { %2140 = dma.done.wait (%p1833_p2), [#allocation5], 32  }
  0x28   : > { %2142 = vsyncadd (%p1833_p2), [#allocation5], 4294967264 }
  0x29   : > { %2144 = dma.done.wait (%p1833_p2), [#allocation8], 32  }
  0x2a   : > { %2146 = vsyncadd (%p1833_p2), [#allocation8], 4294967264 }
  0x2b   : > { %2148 = dma.done.wait (%p1833_p2), [#allocation11], 32  }
  0x2c   : > { %2150 = vsyncadd (%p1833_p2), [#allocation11], 4294967264  ;;  %p678_p6 = scmp.lt.s32.totalorder %s2276_s0, 1  ;;  %s2716_s20 = sld [smem:[#allocation18_spill]]  ;;  %vm734_vm0 = vcmask 261120   ;;  %vm694_vm1 = vcmask 257024  }
  0x2d   : > { %s2717_s22 = sld [smem:[#allocation17_spill]]  ;;  %v2162_v4 = vmov 32.0   ;;  %v799_v21 = vld [vmem:[%s2694_s8 + $0x18] sm:$0xff]  ;;  %v798_v22 = vld [vmem:[%s2694_s8 + $0x10] sm:$0xff]  ;;  %v797_v23 = vld [vmem:[%s2694_s8 + $0x8] sm:$0xff]  ;;  %s2164_s26 = smov 104  }
  0x2e   : > { %s2720_s0 = smov (!%p678_p6, %s2276_s0), 1  ;;  %1893 = vrcp.f32 %v2162_v4  ;;  %819 = vmatpush.msra.mxu1 %v799_v21  ;;  %v796_v24 = vld [vmem:[%s2694_s8] sm:$0xff]  ;;  %v768_v25 = vld [vmem:[%s2692_s6 + $0x18] sm:$0xff]  ;;  %v767_v26 = vld [vmem:[%s2692_s6 + $0x10] sm:$0xff]  ;;  %s2718_s23 = sld [smem:[#allocation19_spill]]  ;;  %vm838_vm9 = vcmask 1047556  }
  0x2f   : > { %s1762_s9 = sshll.u32 %s2720_s0, 3  ;;  %s1761_s19 = sshll.u32 %s2720_s0, 2  ;;  %788 = vmatpush.msra.mxu0 %v768_v25  ;;  %v766_v27 = vld [vmem:[%s2692_s6 + $0x8] sm:$0xff]  ;;  %v765_v30 = vld [vmem:[%s2692_s6] sm:$0xff]  ;;  %v2166_v4 = vmov 1983009808  }
  0x30   : > { %820 = vmatpush.msra.mxu1 %v798_v22  ;;  %v1882_v43 = vld [vmem:[#allocation2] ss:$0 sm:$0xff]  ;;  %v1883_v47 = vld [vmem:[#allocation4] ss:$0 sm:$0xff]  ;;  %v1886_v59 = vld [vmem:[#allocation7] ss:$0 sm:$0xff] }
  0x31   : > { %789 = vmatpush.msra.mxu0 %v767_v26  ;;  %v1885_v56 = vld [vmem:[%s2689_s3] ss:$0 sm:$0xff]  ;;  %v1887_v62 = vld [vmem:[#allocation6] ss:$0 sm:$0xff]  ;;  %s2165_s30 = smov 112   ;;  %vm1135_vm10 = vcmask 64512  }
  0x32   : > { %s685_s2 = scalar_lea.vmem %s2716_s20, %s1762_s9  ;;  %821 = vmatpush.msra.mxu1 %v797_v23  ;;  %s2163_s9 = smov 120   ;;  %vm1240_vm11 = vcmask 60416   ;;  %vm1445_vm12 = vcmask 130048   ;;  %vm1447_vm13 = vcmask 195584  }
  0x33   : > { %v691_v0 = vld [vmem:[%s685_s2] sm:$0xff]  ;;  %s681_s5 = scalar_lea.vmem %s2717_s22, %s1761_s19  ;;  %790 = vmatpush.msra.mxu0 %v766_v27  ;;  %s2168_s20 = smov 96  }
  0x34   : > { %v735_v1 = vsel %vm734_vm0, %v691_v0, 0.0  ;;  %v2358_v2 = vld [vmem:[%s681_s5] sm:$0xf]  ;;  %v1894_v5 = vpop.eup %1893  ;;  %822 = vmatpush.msra.mxu1 %v796_v24  ;;  %s2169_s2 = smov 16   ;;  %s2170_s29 = smov 8  }
  0x35   : > { %736 = vadd.xlane.f32.xlu0 %v735_v1  ;;  %v695_v3 = vsel %vm694_vm1, %v2358_v2, 0.0  ;;  %v699_v6 = vmul.f32 32.0, %v1894_v5  ;;  %vm703_vm2 = vweird.f32 %v1894_v5  ;;  %791 = vmatpush.msra.mxu0 %v765_v30  ;;  %v1884_v53 = vld [vmem:[%s2718_s23] ss:$0 sm:$0xff]  ;;  %s2171_s1 = smov 24  }
  0x37   : > { %v700_v7 = vsub.f32 1.0, %v699_v6 }
  0x39   : > { %v701_v8 = vmul.f32 %v1894_v5, %v700_v7 }
  0x3b   : > { %v702_v9 = vadd.f32 %v1894_v5, %v701_v8 }
  0x3d   : > { %696 = vadd.xlane.f32.xlu0 %v695_v3  ;;  %v2362_v10 = vsel %vm703_vm2, %v1894_v5, %v702_v9  ;;  %v841_v5 = vunpack.c.l.s4 %v2166_v4 }
  0x3f   : > { %v2414_v9 = vunpack.c.0.s8 %v841_v5 }
  0xa8   : > { %v737_v11 = vpop.xlane.xlu0 %736 }
  0xa9   : > { %v738_v12 = vmul.f32 %v737_v11, %v2362_v10 }
  0xab   : > { %v739_v13 = vsub.f32 %v691_v0, %v738_v12 }
  0xad   : > { %v740_v14 = vmul.f32 %v739_v13, %v739_v13 }
  0xaf   : > { %v741_v15 = vsel %vm734_vm0, %v740_v14, 0.0 }
  0xb0   : > { %742 = vadd.xlane.f32.xlu1 %v741_v15  ;;  %v697_v16 = vpop.xlane.xlu0 %696 }
  0xb1   : > { %v705_v17 = vmul.f32 %v2362_v10, %v697_v16 }
  0xb3   : > { %v706_v18 = vsub.f32 %v2358_v2, %v705_v17 }
  0xb5   : > { %v707_v19 = vmul.f32 %v706_v18, %v706_v18 }
  0xb7   : > { %v708_v20 = vsel %vm694_vm1, %v707_v19, 0.0 }
  0xb8   : > { %709 = vadd.xlane.f32.xlu1 %v708_v20 }
 0x123   : > { %v743_v28 = vpop.xlane.xlu1 %742 }
 0x124   : > { %v744_v29 = vmul.f32 %v743_v28, %v2362_v10 }
 0x126   : > { %v745_v31 = vadd.f32 1e-05, %v744_v29 }
 0x128   : > { %1895 = vrsqrt.f32 %v745_v31  ;;  %vm752_vm4 = vweird.f32 %v745_v31 }
 0x12b   : > { %v710_v32 = vpop.xlane.xlu1 %709 }
 0x12c   : > { %v711_v33 = vmul.f32 %v710_v32, %v2362_v10 }
 0x12e   : > { %v1896_v34 = vpop.eup %1895  ;;  %v712_v35 = vadd.f32 1e-05, %v711_v33 }
 0x12f   : > { %v747_v36 = vmul.f32 %v1896_v34, %v745_v31  ;;  %vm753_vm3 = vweird.f32 %v1896_v34 }
 0x130   : > { %1897 = vrsqrt.f32 %v712_v35  ;;  %vm754_vm5 = vmor %vm752_vm4, %vm753_vm3  ;;  %vm719_vm7 = vweird.f32 %v712_v35 }
 0x131   : > { %v748_v37 = vmul.f32 %v1896_v34, %v747_v36 }
 0x133   : > { %v749_v38 = vmul.f32 0.5, %v748_v37 }
 0x135   : > { %v750_v39 = vsub.f32 1.5, %v749_v38 }
 0x136   : > { %v1898_v40 = vpop.eup %1897 }
 0x137   : > { %v751_v41 = vmul.f32 %v1896_v34, %v750_v39  ;;  %v714_v42 = vmul.f32 %v1898_v40, %v712_v35  ;;  %vm720_vm6 = vweird.f32 %v1898_v40 }
 0x138   : > { %vm721_vm8 = vmor %vm719_vm7, %vm720_vm6 }
 0x139   : > { %v755_v44 = vsel %vm754_vm5, %v1896_v34, %v751_v41  ;;  %v715_v45 = vmul.f32 %v1898_v40, %v714_v42 }
 0x13a   : > { %v756_v46 = vmul.f32 %v755_v44, %v739_v13  ;;  %v2167_v13 = vmov 1934713408  }
 0x13b   : > { %v716_v48 = vmul.f32 0.5, %v715_v45  ;;  %v855_v14 = vunpack.c.l.s4 %v2167_v13 }
 0x13c   : > { %v760_v49 = vmul.f32 %v1882_v43, %v756_v46 }
 0x13d   : > { %v717_v50 = vsub.f32 1.5, %v716_v48  ;;  %v2425_v19 = vunpack.c.0.s8 %v855_v14 }
 0x13e   : > { %v764_v51 = vadd.f32 %v1883_v47, %v760_v49 }
 0x13f   : > { %v718_v52 = vmul.f32 %v1898_v40, %v717_v50 }
 0x140   : > { %1765 = vmatmul.msk.f32.vlgmr.msra.gmra.mxu1 %vm734_vm0, %v764_v51 }
 0x141   : > { %v722_v54 = vsel %vm721_vm8, %v1898_v40, %v718_v52 }
 0x142   : > { %v723_v55 = vmul.f32 %v722_v54, %v706_v18 }
 0x144   : > { %v727_v57 = vmul.f32 %v1884_v53, %v723_v55 }
 0x146   : > { %v731_v58 = vadd.f32 %v1885_v56, %v727_v57 }
 0x148   : > { %1764 = vmatmul.msk.f32.vlgmr.msra.gmra.mxu0 %vm734_vm0, %v731_v58 }
 0x1bd   : > { %v824_v60 = vpop.f32.mrf.mxu1 }
 0x1be   : > { %v2403_v61 = vadd.f32 %v1886_v59, %v824_v60 }
 0x1c0   : > { %894 = vrot.lane.b32.xlu2 %v2403_v61, %s2163_s9  ;;  %900 = vrot.lane.b32.xlu0 %v2403_v61, %s2164_s26  ;;  %v905_v8 = vrot.slane %v2403_v61, 4 }
 0x1c5   : > { %v793_v63 = vpop.f32.mrf.mxu0 }
 0x1c6   : > { %v794_v0 = vadd.f32 %v1887_v62, %v793_v63 }
 0x1c8   : > { %897 = vrot.lane.b32.xlu2 %v2403_v61, %s2165_s30  ;;  %831 = vrot.lane.b32.xlu1 %v794_v0, %s2165_s30 }
 0x1d0   : > { %834 = vrot.lane.b32.xlu2 %v794_v0, %s2164_s26  ;;  %s689_s26 = scalar_lea.vmem %s2704_s18, %s1761_s19 }
 0x1d8   : > { %828 = vrot.lane.b32.xlu2 %v794_v0, %s2163_s9 }
 0x21a   : > { %v2408_v1 = vpop.permute.xlu2 %894 }
 0x21b   : > { %v917_v16 = vrot.slane %v2408_v1, 4 }
 0x222   : > { %v2410_v3 = vpop.permute.xlu2 %897 }
 0x223   : > { %v903_v7 = vrot.slane %v2410_v3, 4  ;;  %v906_v11 = vsel %vm838_vm9, %v2410_v3, %v905_v8 }
 0x224   : > { %v914_v15 = vperm.slane %v906_v11, %v2414_v9 }
 0x225   : > { %v904_v12 = vsel %vm838_vm9, %v903_v7, %v2403_v61 }
 0x226   : > { %v910_v17 = vperm.slane %v904_v12, %v2414_v9  ;;  %v941_v22 = vrot.slane %v914_v15, 4 }
 0x228   : > { %v929_v27 = vrot.slane %v910_v17, 4 }
 0x22a   : > { %v835_v6 = vpop.permute.xlu2 %834 }
 0x22b   : > { %v844_v25 = vrot.slane %v835_v6, 4 }
 0x232   : > { %v2423_v18 = vpop.permute.xlu0 %900  ;;  %v829_v23 = vpop.permute.xlu2 %828 }
 0x233   : > { %v915_v20 = vrot.slane %v2423_v18, 4  ;;  %v918_v21 = vsel %vm838_vm9, %v2423_v18, %v917_v16  ;;  %v845_v31 = vsel %vm838_vm9, %v844_v25, %v829_v23 }
 0x234   : > { %v926_v24 = vperm.slane %v918_v21, %v2414_v9  ;;  %v849_v39 = vperm.slane %v845_v31, %v2414_v9 }
 0x235   : > { %v916_v26 = vsel %vm838_vm9, %v915_v20, %v2408_v1 }
 0x236   : > { %v922_v28 = vperm.slane %v916_v26, %v2414_v9  ;;  %v939_v29 = vrot.slane %v926_v24, 4  ;;  %v942_v30 = vsel %vm838_vm9, %v926_v24, %v941_v22  ;;  %v850_v57 = vrot.slane %v849_v39, 4 }
 0x237   : > { %v950_v32 = vperm.slane %v942_v30, %v2425_v19 }
 0x238   : > { %v927_v33 = vrot.slane %v922_v28, 4  ;;  %v930_v34 = vsel %vm838_vm9, %v922_v28, %v929_v27  ;;  %v940_v35 = vsel %vm838_vm9, %v939_v29, %v914_v15 }
 0x239   : > { %v938_v36 = vperm.slane %v930_v34, %v2425_v19  ;;  %v946_v37 = vperm.slane %v940_v35, %v2425_v19  ;;  %v957_v38 = vrot.slane %v950_v32, 4 }
 0x23a   : > { %v928_v40 = vsel %vm838_vm9, %v927_v33, %v910_v17  ;;  %v832_v41 = vpop.permute.xlu1 %831 }
 0x23b   : > { %v934_v42 = vperm.slane %v928_v40, %v2425_v19  ;;  %v953_v43 = vrot.slane %v938_v36, 4  ;;  %v955_v44 = vrot.slane %v946_v37, 4  ;;  %v958_v45 = vsel %vm838_vm9, 0.0, %v957_v38 }
 0x23c   : > { %v970_v46 = vsel %vm838_vm9, %v957_v38, %v946_v37  ;;  %v975_v47 = vrot.slane %v958_v45, 4  ;;  %v837_v48 = vrot.slane %v832_v41, 4 }
 0x23d   : > { %v954_v49 = vsel %vm838_vm9, 0.0, %v953_v43  ;;  %v956_v50 = vsel %vm838_vm9, 0.0, %v955_v44  ;;  %v951_v51 = vrot.slane %v934_v42, 4  ;;  %v959_v52 = vsel %vm838_vm9, %v953_v43, %v934_v42 }
 0x23e   : > { %v839_v53 = vsel %vm838_vm9, %v837_v48, %v794_v0  ;;  %v963_v54 = vperm.slane %v959_v52, %v2414_v9  ;;  %v964_v55 = vrot.slane %v954_v49, 4  ;;  %v974_v56 = vperm.slane %v970_v46, %v2414_v9 }
 0x23f   : > { %v843_v58 = vperm.slane %v839_v53, %v2414_v9  ;;  %v952_v59 = vsel %vm838_vm9, 0.0, %v951_v51  ;;  %v976_v60 = vsel %vm838_vm9, %v975_v47, %v956_v50 }
 0x240   : > { %v965_v62 = vsel %vm838_vm9, %v964_v55, %v952_v59  ;;  %v980_v63 = vperm.slane %v976_v60, %v2414_v9  ;;  %v983_v4 = vrot.slane %v963_v54, 4  ;;  %v995_v5 = vrot.slane %v974_v56, 4 }
 0x241   : > { %v851_v0 = vsel %vm838_vm9, %v850_v57, %v843_v58  ;;  %v852_v6 = vrot.slane %v843_v58, 4  ;;  %v969_v7 = vperm.slane %v965_v62, %v2414_v9  ;;  %v1877_v60 = vpack.i.bf16 %v2408_v1, %v2423_v18 }
 0x242   : > { %v857_v8 = vperm.slane %v851_v0, %v2425_v19  ;;  %v996_v11 = vsel %vm838_vm9, %v980_v63, %v995_v5  ;;  %v993_v12 = vrot.slane %v980_v63, 4  ;;  %v1872_v62 = vpack.i.bf16 %v2403_v61, %v2410_v3 }
 0x243   : > { %v853_v13 = vsel %vm838_vm9, %v849_v39, %v852_v6  ;;  %v984_v14 = vsel %vm838_vm9, %v969_v7, %v983_v4  ;;  %v1004_v15 = vperm.slane %v996_v11, %v2425_v19  ;;  %v981_v16 = vrot.slane %v969_v7, 4 }
 0x244   : > { %v861_v17 = vperm.slane %v853_v13, %v2425_v19  ;;  %v992_v20 = vperm.slane %v984_v14, %v2425_v19  ;;  %v994_v21 = vsel %vm838_vm9, %v993_v12, %v974_v56  ;;  %v862_v25 = vrot.slane %v857_v8, 4 }
 0x245   : > { %v1009_v22 = vrot.slane %v1004_v15, 4  ;;  %v982_v23 = vsel %vm838_vm9, %v981_v16, %v963_v54  ;;  %v1000_v24 = vperm.slane %v994_v21, %v2425_v19 }
 0x246   : > { %v864_v26 = vrot.slane %v861_v17, 4  ;;  %v988_v27 = vperm.slane %v982_v23, %v2425_v19  ;;  %v863_v36 = vsel %vm838_vm9, 0.0, %v862_v25  ;;  %v1011_v43 = vrot.slane %v992_v20, 4 }
 0x247   : > { %v1010_v28 = vsel %vm838_vm9, %v1009_v22, %v992_v20  ;;  %v1005_v29 = vrot.slane %v1000_v24, 4 }
 0x248   : > { %v865_v30 = vsel %vm838_vm9, 0.0, %v864_v26  ;;  %1770 = vmatpush.xpose.msk.msrb.mxu0 %vm1135_vm10, %v1010_v28  ;;  %v1007_v31 = vrot.slane %v988_v27, 4  ;;  %v866_v32 = vsel %vm838_vm9, %v864_v26, %v857_v8  ;;  %v1012_v47 = vsel %vm838_vm9, %v1004_v15, %v1011_v43 }
 0x249   : > { %v871_v33 = vrot.slane %v865_v30, 4  ;;  %v1006_v34 = vsel %vm838_vm9, %v1005_v29, %v988_v27  ;;  %v870_v35 = vperm.slane %v866_v32, %v2414_v9 }
 0x24a   : > { %1766 = vmatpush.xpose.msk.msra.mxu3 %vm1135_vm10, %v1006_v34  ;;  %v1008_v37 = vsel %vm838_vm9, %v1000_v24, %v1007_v31 }
 0x24b   : > { %v872_v38 = vsel %vm838_vm9, %v871_v33, %v863_v36  ;;  %v879_v39 = vrot.slane %v870_v35, 4 }
 0x24c   : > { %v876_v40 = vperm.slane %v872_v38, %v2414_v9 }
 0x24e   : > { %1768 = vmatpush.xpose.msk.msrb.mxu3 %vm1135_vm10, %v1008_v37  ;;  %v880_v41 = vsel %vm838_vm9, %v876_v40, %v879_v39  ;;  %v877_v42 = vrot.slane %v876_v40, 4 }
 0x24f   : > { %v888_v44 = vperm.slane %v880_v41, %v2425_v19 }
 0x250   : > { %v878_v45 = vsel %vm838_vm9, %v877_v42, %v870_v35 }
 0x251   : > { %1771 = vmatmul.msk.f32.vlgmr.msrb.gmra.mxu0 %vm1135_vm10, %v888_v44  ;;  %v884_v46 = vperm.slane %v878_v45, %v2425_v19  ;;  %v891_v50 = vrot.slane %v888_v44, 4 }
 0x253   : > { %1767 = vmatmul.msk.f32.vlgmr.msra.gmra.mxu3 %vm1135_vm10, %v884_v46  ;;  %v889_v48 = vrot.slane %v884_v46, 4  ;;  %v892_v51 = vsel %vm838_vm9, 0.0, %v891_v50 }
 0x254   : > { %1772 = vmatpush.xpose.msk.msra.mxu3 %vm1135_vm10, %v1012_v47 }
 0x255   : > { %v890_v49 = vsel %vm838_vm9, 0.0, %v889_v48 }
 0x25b   : > { %1769 = vmatmul.msk.f32.vlgmr.msrb.gmra.mxu3 %vm1135_vm10, %v890_v49 }
 0x263   : > { %1773 = vmatmul.msk.f32.vlgmr.msra.gmra.mxu3 %vm1135_vm10, %v892_v51 }
 0x2ce   : > { %v1211_v52 = vpop.f32.mrf.mxu0 }
 0x2cf   : > { %v1247_v53 = vsel %vm1240_vm11, %v1211_v52, -inf }
 0x2d0   : > { %1248 = vmax.xlane.f32.xlu1 %v1247_v53 }
 0x2d6   : > { %v1159_v54 = vpop.f32.mrf.mxu3 }
 0x2d7   : > { %v1241_v55 = vsel %vm1240_vm11, %v1159_v54, -inf }
 0x2d8   : > { %1242 = vmax.xlane.f32.xlu2 %v1241_v55 }
 0x2de   : > { %v1185_v56 = vpop.f32.mrf.mxu3 }
 0x2df   : > { %v1244_v57 = vsel %vm1240_vm11, %v1185_v56, -inf }
 0x2e0   : > { %1245 = vmax.xlane.f32.xlu2 %v1244_v57 }
 0x2e6   : > { %v1237_v58 = vpop.f32.mrf.mxu3 }
 0x2e7   : > { %v1250_v59 = vsel %vm1240_vm11, %v1237_v58, -inf }
 0x2e8   : > { %1251 = vmax.xlane.f32.xlu0 %v1250_v59 }
 0x2f8   : > { %1878 = vrot.lane.b32.xlu2 %v1877_v60, %s2168_s20 }
 0x2fc   : > { %1873 = vrot.lane.b32.xlu0 %v1872_v62, %s2168_s20 }
 0x343   : > { %v1249_v63 = vpop.xlane.xlu1 %1248 }
 0x344   : > { %v1255_v4 = vsub.f32 %v1211_v52, %v1249_v63 }
 0x346   : > { %v1261_v5 = vmul.f32 1.442695, %v1255_v4 }
 0x348   : > { %1899 = vpow2.f32 %v1261_v5 }
 0x34b   : > { %v1243_v0 = vpop.xlane.xlu2 %1242 }
 0x34c   : > { %v1253_v61 = vsub.f32 %v1159_v54, %v1243_v0 }
 0x34e   : > { %v2502_v6 = vpop.eup %1899  ;;  %v1257_v15 = vmul.f32 1.442695, %v1253_v61 }
 0x34f   : > { %v1271_v7 = vsel %vm1240_vm11, %v2502_v6, 0.0 }
 0x350   : > { %1272 = vadd.xlane.f32.xlu0 %v1271_v7 }
 0x353   : > { %v1246_v8 = vpop.xlane.xlu2 %1245 }
 0x354   : > { %v1254_v11 = vsub.f32 %v1185_v56, %v1246_v8 }
 0x356   : > { %v1259_v1 = vmul.f32 1.442695, %v1254_v11 }
 0x358   : > { %1901 = vpow2.f32 %v1259_v1 }
 0x35b   : > { %v1252_v18 = vpop.xlane.xlu0 %1251  ;;  %v1879_v16 = vpop.permute.xlu2 %1878 }
 0x35c   : > { %v1256_v12 = vsub.f32 %v1237_v58, %v1252_v18  ;;  %v1881_v17 = vunpack.i.h.bf16 %v1879_v16  ;;  %v1880_v20 = vunpack.i.l.bf16 %v1879_v16 }
 0x35e   : > { %v2506_v13 = vpop.eup %1901  ;;  %v1263_v3 = vmul.f32 1.442695, %v1256_v12  ;;  %v1039_v23 = vrot.slane %v1881_v17, 4  ;;  %v1037_v24 = vrot.slane %v1880_v20, 4 }
 0x35f   : > { %v1268_v14 = vsel %vm1240_vm11, %v2506_v13, 0.0 }
 0x360   : > { %1903 = vpow2.f32 %v1263_v3  ;;  %1269 = vadd.xlane.f32.xlu1 %v1268_v14  ;;  %v1038_v26 = vsel %vm838_vm9, %v1037_v24, %v1881_v17  ;;  %v1040_v27 = vsel %vm838_vm9, %v1880_v20, %v1039_v23 }
 0x361   : > { %1905 = vpow2.f32 %v1257_v15  ;;  %v1044_v32 = vperm.slane %v1038_v26, %v2414_v9  ;;  %v1048_v33 = vperm.slane %v1040_v27, %v2414_v9 }
 0x363   : > { %v1049_v38 = vrot.slane %v1044_v32, 4  ;;  %v1061_v39 = vrot.slane %v1048_v33, 4 }
 0x366   : > { %v2510_v21 = vpop.eup %1903 }
 0x367   : > { %v1274_v22 = vsel %vm1240_vm11, %v2510_v21, 0.0  ;;  %v2514_v25 = vpop.eup %1905 }
 0x368   : > { %1275 = vadd.xlane.f32.xlu1 %v1274_v22  ;;  %v1265_v31 = vsel %vm1240_vm11, %v2514_v25, 0.0 }
 0x36e   : > { %v1874_v28 = vpop.permute.xlu0 %1873 }
 0x36f   : > { %v1876_v29 = vunpack.i.h.bf16 %v1874_v28  ;;  %v1875_v30 = vunpack.i.l.bf16 %v1874_v28 }
 0x370   : > { %1266 = vadd.xlane.f32.xlu1 %v1265_v31 }
 0x371   : > { %v1027_v34 = vrot.slane %v1876_v29, 4  ;;  %v1025_v35 = vrot.slane %v1875_v30, 4 }
 0x373   : > { %v1026_v36 = vsel %vm838_vm9, %v1025_v35, %v1876_v29  ;;  %v1028_v37 = vsel %vm838_vm9, %v1875_v30, %v1027_v34 }
 0x374   : > { %v1032_v40 = vperm.slane %v1026_v36, %v2414_v9  ;;  %v1036_v41 = vperm.slane %v1028_v37, %v2414_v9 }
 0x376   : > { %v1050_v42 = vsel %vm838_vm9, %v1049_v38, %v1032_v40  ;;  %v1051_v43 = vrot.slane %v1032_v40, 4  ;;  %v1062_v44 = vsel %vm838_vm9, %v1061_v39, %v1036_v41  ;;  %v1063_v45 = vrot.slane %v1036_v41, 4 }
 0x377   : > { %v1056_v46 = vperm.slane %v1050_v42, %v2425_v19  ;;  %v1068_v47 = vperm.slane %v1062_v44, %v2425_v19 }
 0x378   : > { %v1052_v48 = vsel %vm838_vm9, %v1044_v32, %v1051_v43  ;;  %v1064_v49 = vsel %vm838_vm9, %v1048_v33, %v1063_v45 }
 0x379   : > { %v1060_v50 = vperm.slane %v1052_v48, %v2425_v19  ;;  %v1072_v51 = vperm.slane %v1064_v49, %v2425_v19  ;;  %v1073_v52 = vrot.slane %v1056_v46, 4  ;;  %v1077_v54 = vrot.slane %v1068_v47, 4 }
 0x37b   : > { %v1075_v53 = vrot.slane %v1060_v50, 4  ;;  %v1079_v55 = vrot.slane %v1072_v51, 4  ;;  %v1074_v5 = vsel %vm838_vm9, 0.0, %v1073_v52  ;;  %v1078_v0 = vsel %vm838_vm9, 0.0, %v1077_v54 }
 0x37d   : > { %v1076_v56 = vsel %vm838_vm9, 0.0, %v1075_v53  ;;  %v1080_v57 = vsel %vm838_vm9, 0.0, %v1079_v55  ;;  %v1081_v58 = vsel %vm838_vm9, %v1075_v53, %v1056_v46  ;;  %v1092_v59 = vsel %vm838_vm9, %v1079_v55, %v1068_v47 }
 0x37e   : > { %v1086_v60 = vrot.slane %v1076_v56, 4  ;;  %v1097_v62 = vrot.slane %v1080_v57, 4  ;;  %v1085_v63 = vperm.slane %v1081_v58, %v2414_v9  ;;  %v1096_v4 = vperm.slane %v1092_v59, %v2414_v9 }
 0x380   : > { %v1087_v7 = vsel %vm838_vm9, %v1086_v60, %v1074_v5  ;;  %v1098_v8 = vsel %vm838_vm9, %v1097_v62, %v1078_v0  ;;  %v1105_v11 = vrot.slane %v1085_v63, 4  ;;  %v1117_v1 = vrot.slane %v1096_v4, 4 }
 0x381   : > { %v1091_v18 = vperm.slane %v1087_v7, %v2414_v9  ;;  %v1102_v12 = vperm.slane %v1098_v8, %v2414_v9 }
 0x383   : > { %v1106_v61 = vsel %vm838_vm9, %v1091_v18, %v1105_v11  ;;  %v1118_v3 = vsel %vm838_vm9, %v1102_v12, %v1117_v1  ;;  %v1103_v14 = vrot.slane %v1091_v18, 4  ;;  %v1115_v15 = vrot.slane %v1102_v12, 4 }
 0x384   : > { %v1114_v16 = vperm.slane %v1106_v61, %v2425_v19  ;;  %v1126_v17 = vperm.slane %v1118_v3, %v2425_v19 }
 0x385   : > { %v1104_v20 = vsel %vm838_vm9, %v1103_v14, %v1085_v63  ;;  %v1116_v22 = vsel %vm838_vm9, %v1115_v15, %v1096_v4 }
 0x386   : > { %v1133_v23 = vrot.slane %v1114_v16, 4  ;;  %v1110_v24 = vperm.slane %v1104_v20, %v2425_v19  ;;  %v1122_v26 = vperm.slane %v1116_v22, %v2425_v19  ;;  %v1131_v27 = vrot.slane %v1126_v17, 4  ;;  %v1449_v20 = vld [vmem:[%s2696_s10] sm:$0xff] }
 0x388   : > { %v1134_v28 = vsel %vm838_vm9, %v1126_v17, %v1133_v23  ;;  %v1127_v29 = vrot.slane %v1122_v26, 4  ;;  %v1129_v30 = vrot.slane %v1110_v24, 4  ;;  %v1132_v33 = vsel %vm838_vm9, %v1131_v27, %v1114_v16  ;;  %v1451_v17 = vld [vmem:[%s2696_s10 + $0x10] sm:$0xff] }
 0x389   : > { %1372 = vmatpush.msrb.mxu3 %v1134_v28 }
 0x38a   : > { %v1128_v31 = vsel %vm838_vm9, %v1127_v29, %v1110_v24  ;;  %v1130_v32 = vsel %vm838_vm9, %v1122_v26, %v1129_v30  ;;  %v1888_v29 = vld [vmem:[#allocation9] ss:$0 sm:$0xff] }
 0x38b   : > { %1303 = vmatpush.msra.mxu0 %v1128_v31  ;;  %1326 = vmatpush.msrb.mxu1 %v1130_v32 }
 0x38d   : > { %1349 = vmatpush.msra.mxu1 %v1132_v33 }
 0x3c3   : > { %v1273_v35 = vpop.xlane.xlu0 %1272 }
 0x3d3   : > { %v1270_v34 = vpop.xlane.xlu1 %1269 }
 0x3d4   : > { %1907 = vrcp.f32 %v1270_v34 }
 0x3d5   : > { %1909 = vrcp.f32 %v1273_v35 }
 0x3da   : > { %v1908_v36 = vpop.eup %1907 }
 0x3db   : > { %v1276_v37 = vpop.xlane.xlu1 %1275  ;;  %v1282_v38 = vmul.f32 %v1908_v36, %v2506_v13  ;;  %v1910_v39 = vpop.eup %1909 }
 0x3dc   : > { %1911 = vrcp.f32 %v1276_v37  ;;  %v1283_v41 = vmul.f32 %v1910_v39, %v2502_v6  ;;  %v1516_v39 = vld [vmem:[%s2700_s14 + $0x18] sm:$0xff] }
 0x3dd   : > { %1775 = vmatmul.msk.f32.vlgmr.msrb.gmra.mxu1 %vm1135_vm10, %v1282_v38 }
 0x3de   : > { %1536 = vmatpush.msrb.mxu1 %v1516_v39 }
 0x3e2   : > { %v1912_v40 = vpop.eup %1911 }
 0x3e3   : > { %v1284_v42 = vmul.f32 %v1912_v40, %v2510_v21  ;;  %v1267_v43 = vpop.xlane.xlu1 %1266  ;;  %v1514_v40 = vld [vmem:[%s2700_s14 + $0x8] sm:$0xff] }
 0x3e4   : > { %1913 = vrcp.f32 %v1267_v43 }
 0x3e5   : > { %1776 = vmatmul.msk.f32.vlgmr.msra.gmra.mxu1 %vm1135_vm10, %v1283_v41  ;;  %1777 = vmatmul.msk.f32.vlgmr.msrb.gmra.mxu3 %vm1135_vm10, %v1284_v42  ;;  %v1513_v41 = vld [vmem:[%s2700_s14] sm:$0xff] }
 0x3ea   : > { %v1914_v44 = vpop.eup %1913 }
 0x3eb   : > { %v1281_v45 = vmul.f32 %v1914_v44, %v2514_v25 }
 0x3ed   : > { %1774 = vmatmul.msk.f32.vlgmr.msra.gmra.mxu0 %vm1135_vm10, %v1281_v45 }
 0x45a   : > { %v1328_v13 = vpop.f32.mrf.mxu1 }
 0x462   : > { %v1351_v46 = vpop.f32.mrf.mxu1 }
 0x463   : > { %v1377_v48 = vrot.slane %v1351_v46, 4 }
 0x468   : > { %v1374_v47 = vpop.f32.mrf.mxu3 }
 0x469   : > { %v1383_v49 = vrot.slane %v1374_v47, 4 }
 0x46a   : > { %v1305_v50 = vpop.f32.mrf.mxu0 }
 0x46b   : > { %v1384_v6 = vsel %vm838_vm9, %v1383_v49, %v1328_v13  ;;  %v1378_v21 = vsel %vm838_vm9, %v1377_v48, %v1305_v50  ;;  %v1889_v50 = vld [vmem:[%s2698_s12] ss:$0 sm:$0xff] }
 0x46c   : > { %v1388_v51 = vperm.slane %v1384_v6, %v2414_v9  ;;  %v1382_v52 = vperm.slane %v1378_v21, %v2414_v9 }
 0x46e   : > { %v1389_v53 = vrot.slane %v1388_v51, 4  ;;  %v1391_v54 = vrot.slane %v1382_v52, 4 }
 0x470   : > { %v1390_v25 = vsel %vm838_vm9, %v1389_v53, %v1382_v52  ;;  %v1392_v55 = vsel %vm838_vm9, %v1388_v51, %v1391_v54  ;;  %v1580_v53 = vld [vmem:[%s2702_s16 + $0x78] sm:$0xff]  ;;  %v1579_v54 = vld [vmem:[%s2702_s16 + $0x70] sm:$0xff] }
 0x471   : > { %v1396_v56 = vperm.slane %v1390_v25, %v2425_v19  ;;  %v1400_v57 = vperm.slane %v1392_v55, %v2425_v19  ;;  %1581 = vmatpush.msra.mxu2 %v1580_v53  ;;  %v1578_v25 = vld [vmem:[%s2702_s16 + $0x68] sm:$0xff]  ;;  %v1577_v55 = vld [vmem:[%s2702_s16 + $0x60] sm:$0xff] }
 0x473   : > { %v1401_v58 = vrot.slane %v1396_v56, 4  ;;  %v1403_v59 = vrot.slane %v1400_v57, 4  ;;  %1582 = vmatpush.msra.mxu2 %v1579_v54  ;;  %v1575_v57 = vld [vmem:[%s2702_s16 + $0x50] sm:$0xff] }
 0x475   : > { %v1404_v60 = vsel %vm838_vm9, 0.0, %v1403_v59  ;;  %v1405_v62 = vsel %vm838_vm9, %v1403_v59, %v1396_v56  ;;  %v1402_v5 = vsel %vm838_vm9, 0.0, %v1401_v58  ;;  %1583 = vmatpush.msra.mxu2 %v1578_v25  ;;  %v1576_v56 = vld [vmem:[%s2702_s16 + $0x58] sm:$0xff]  ;;  %v1574_v58 = vld [vmem:[%s2702_s16 + $0x48] sm:$0xff]  ;;  %v1573_v59 = vld [vmem:[%s2702_s16 + $0x40] sm:$0xff] }
 0x476   : > { %v1410_v63 = vrot.slane %v1404_v60, 4  ;;  %v1409_v4 = vperm.slane %v1405_v62, %v2414_v9  ;;  %v1572_v60 = vld [vmem:[%s2702_s16 + $0x38] sm:$0xff]  ;;  %v1571_v62 = vld [vmem:[%s2702_s16 + $0x30] sm:$0xff] }
 0x477   : > { %1584 = vmatpush.msra.mxu2 %v1577_v55 }
 0x478   : > { %v1411_v0 = vsel %vm838_vm9, %v1410_v63, %v1402_v5  ;;  %v1418_v7 = vrot.slane %v1409_v4, 4  ;;  %v1570_v63 = vld [vmem:[%s2702_s16 + $0x28] sm:$0xff]  ;;  %v1568_v5 = vld [vmem:[%s2702_s16 + $0x18] sm:$0xff] }
 0x479   : > { %v1415_v8 = vperm.slane %v1411_v0, %v2414_v9  ;;  %v1452_v9 = vld [vmem:[%s2696_s10 + $0x18] sm:$0xff]  ;;  %1585 = vmatpush.msra.mxu2 %v1576_v56  ;;  %v1567_v0 = vld [vmem:[%s2702_s16 + $0x10] sm:$0xff] }
 0x47a   : > { %1472 = vmatpush.msrb.mxu0 %v1452_v9 }
 0x47b   : > { %v1419_v11 = vsel %vm838_vm9, %v1415_v8, %v1418_v7  ;;  %v1416_v1 = vrot.slane %v1415_v8, 4  ;;  %1586 = vmatpush.msra.mxu2 %v1575_v57  ;;  %v1891_v7 = vld [vmem:[#allocation10] ss:$0 sm:$0xff] }
 0x47c   : > { %v1427_v18 = vperm.slane %v1419_v11, %v2425_v19  ;;  %1473 = vmatpush.msrb.mxu0 %v1451_v17  ;;  %v1566_v8 = vld [vmem:[%s2702_s16 + $0x8] sm:$0xff] }
 0x47d   : > { %v1417_v12 = vsel %vm838_vm9, %v1416_v1, %v1409_v4  ;;  %1587 = vmatpush.msra.mxu2 %v1574_v58  ;;  %v1569_v4 = vld [vmem:[%s2702_s16 + $0x20] sm:$0xff] }
 0x47e   : > { %1437 = vrot.lane.b32.xlu1 %v1427_v18, %s2169_s2  ;;  %v1423_v61 = vperm.slane %v1417_v12, %v2425_v19  ;;  %v1430_v15 = vrot.slane %v1427_v18, 4  ;;  %v1450_v19 = vld [vmem:[%s2696_s10 + $0x8] sm:$0xff]  ;;  %v1565_v1 = vld [vmem:[%s2702_s16] sm:$0xff] }
 0x47f   : > { %1474 = vmatpush.msrb.mxu0 %v1450_v19  ;;  %1588 = vmatpush.msra.mxu2 %v1573_v59 }
 0x480   : > { %v1428_v3 = vrot.slane %v1423_v61, 4  ;;  %v1431_v16 = vsel %vm838_vm9, 0.0, %v1430_v15 }
 0x481   : > { %1475 = vmatpush.msrb.mxu0 %v1449_v20  ;;  %1589 = vmatpush.msra.mxu2 %v1572_v60 }
 0x482   : > { %v1429_v14 = vsel %vm838_vm9, 0.0, %v1428_v3 }
 0x483   : > { %1433 = vrot.lane.b32.xlu2 %v1429_v14, %s2170_s29  ;;  %1590 = vmatpush.msra.mxu2 %v1571_v62 }
 0x485   : > { %1591 = vmatpush.msra.mxu2 %v1570_v63 }
 0x487   : > { %1592 = vmatpush.msra.mxu2 %v1569_v4 }
 0x489   : > { %1593 = vmatpush.msra.mxu2 %v1568_v5 }
 0x48b   : > { %1441 = vrot.lane.b32.xlu2 %v1431_v16, %s2171_s1  ;;  %1594 = vmatpush.msra.mxu2 %v1567_v0 }
 0x48d   : > { %1595 = vmatpush.msra.mxu2 %v1566_v8 }
 0x48f   : > { %1596 = vmatpush.msra.mxu2 %v1565_v1 }
 0x4dd   : > { %v1434_v22 = vpop.permute.xlu2 %1433 }
 0x4de   : > { %v1444_v23 = vsel %vm1135_vm10, %v1423_v61, %v1434_v22 }
 0x4e5   : > { %v1442_v26 = vpop.permute.xlu2 %1441 }
 0x4f0   : > { %v1438_v24 = vpop.permute.xlu1 %1437 }
 0x4f1   : > { %v1446_v27 = vsel %vm1445_vm12, %v1444_v23, %v1438_v24 }
 0x4f2   : > { %v1448_v28 = vsel %vm1447_vm13, %v1446_v27, %v1442_v26 }
 0x4f3   : > { %1778 = vmatmul.msk.f32.vlgmr.msrb.gmra.mxu0 %vm734_vm0, %v1448_v28  ;;  %v1892_v28 = vld [vmem:[#allocation12] ss:$0 sm:$0xff] }
 0x570   : > { %v1477_v30 = vpop.f32.mrf.mxu0 }
 0x571   : > { %v1478_v31 = vadd.f32 %v1888_v29, %v1477_v30 }
 0x573   : > { %v2601_v32 = vadd.f32 %v1478_v31, %v2358_v2  ;;  %v1515_v2 = vld [vmem:[%s2700_s14 + $0x10] sm:$0xff] }
 0x574   : > { %1537 = vmatpush.msrb.mxu1 %v1515_v2 }
 0x575   : > { %v1483_v33 = vsel %vm694_vm1, %v2601_v32, 0.0 }
 0x576   : > { %1484 = vadd.xlane.f32.xlu2 %v1483_v33  ;;  %1538 = vmatpush.msrb.mxu1 %v1514_v40 }
 0x578   : > { %1539 = vmatpush.msrb.mxu1 %v1513_v41 }
 0x5e9   : > { %v1485_v34 = vpop.xlane.xlu2 %1484 }
 0x5ea   : > { %v1486_v35 = vmul.f32 %v1485_v34, %v2362_v10 }
 0x5ec   : > { %v1487_v36 = vsub.f32 %v2601_v32, %v1486_v35 }
 0x5ee   : > { %v1488_v37 = vmul.f32 %v1487_v36, %v1487_v36 }
 0x5f0   : > { %v1489_v38 = vsel %vm694_vm1, %v1488_v37, 0.0 }
 0x5f1   : > { %1490 = vadd.xlane.f32.xlu1 %v1489_v38 }
 0x664   : > { %v1491_v42 = vpop.xlane.xlu1 %1490 }
 0x665   : > { %v1492_v43 = vmul.f32 %v1491_v42, %v2362_v10  ;;  %v1890_v10 = vld [vmem:[%s2699_s13] ss:$0 sm:$0xff] }
 0x667   : > { %v1493_v44 = vadd.f32 1e-05, %v1492_v43 }
 0x669   : > { %1915 = vrsqrt.f32 %v1493_v44  ;;  %vm1500_vm15 = vweird.f32 %v1493_v44 }
 0x66f   : > { %v1916_v45 = vpop.eup %1915 }
 0x670   : > { %v1495_v13 = vmul.f32 %v1916_v45, %v1493_v44  ;;  %vm1501_vm14 = vweird.f32 %v1916_v45 }
 0x671   : > { %vm1502_vm2 = vmor %vm1500_vm15, %vm1501_vm14 }
 0x672   : > { %v1496_v46 = vmul.f32 %v1916_v45, %v1495_v13 }
 0x674   : > { %v1497_v47 = vmul.f32 0.5, %v1496_v46 }
 0x676   : > { %v1498_v48 = vsub.f32 1.5, %v1497_v47 }
 0x678   : > { %v1499_v49 = vmul.f32 %v1916_v45, %v1498_v48 }
 0x67a   : > { %v1503_v6 = vsel %vm1502_vm2, %v1916_v45, %v1499_v49 }
 0x67b   : > { %v1504_v21 = vmul.f32 %v1503_v6, %v1487_v36 }
 0x67d   : > { %v1508_v51 = vmul.f32 %v1889_v50, %v1504_v21 }
 0x67f   : > { %v1512_v52 = vadd.f32 %v1890_v10, %v1508_v51 }
 0x681   : > { %1779 = vmatmul.msk.f32.vlgmr.msrb.gmra.mxu1 %vm734_vm0, %v1512_v52 }
 0x6fe   : > { %v1541_v11 = vpop.f32.mrf.mxu1 }
 0x6ff   : > { %v1542_v18 = vadd.f32 %v1891_v7, %v1541_v11 }
 0x701   : > { %v1780_v12 = vmul.f32 -1.702, %v1542_v18 }
 0x703   : > { %v1546_v61 = vmul.f32 1.442695, %v1780_v12 }
 0x705   : > { %1917 = vpow2.f32 %v1546_v61 }
 0x70b   : > { %v1918_v3 = vpop.eup %1917 }
 0x70c   : > { %v1548_v14 = vadd.f32 1.0, %v1918_v3 }
 0x70e   : > { %1919 = vrcp.f32 %v1548_v14  ;;  %v1560_v17 = vand.u32 2147483648, %v1548_v14  ;;  %v1558_v20 = vand.u32 2147483647, %v1548_v14  ;;  %vm1554_vm3 = vweird.f32 %v1548_v14 }
 0x710   : > { %v1561_v23 = vor.u32 1.1754944e-38, %v1560_v17  ;;  %vm1559_vm5 = vcmp.eq.f32.partialorder %v1558_v20, 8.507059e+37 }
 0x714   : > { %v1920_v15 = vpop.eup %1919 }
 0x715   : > { %v1550_v16 = vmul.f32 %v1920_v15, %v1548_v14  ;;  %vm1555_vm0 = vweird.f32 %v1920_v15 }
 0x716   : > { %vm1556_vm4 = vmor %vm1554_vm3, %vm1555_vm0 }
 0x717   : > { %v1551_v9 = vsub.f32 1.0, %v1550_v16 }
 0x719   : > { %v1552_v19 = vmul.f32 %v1920_v15, %v1551_v9 }
 0x71b   : > { %v1553_v22 = vadd.f32 %v1920_v15, %v1552_v19 }
 0x71d   : > { %v1557_v24 = vsel %vm1556_vm4, %v1920_v15, %v1553_v22 }
 0x71e   : > { %v1562_v26 = vsel %vm1559_vm5, %v1561_v23, %v1557_v24 }
 0x71f   : > { %v1564_v27 = vmul.f32 %v1562_v26, %v1542_v18 }
 0x721   : > { %1597 = vmatmul.f32.vlgmr.msra.gmra.mxu2 %v1564_v27 }
 0x7a4   : > { %v1598_v29 = vpop.f32.mrf.mxu2 }
 0x7a5   : > { %v1601_v30 = vadd.f32 %v1598_v29, %v2601_v32 }
 0x7a7   : > { %v1606_v31 = vadd.f32 %v1892_v28, %v1601_v30 }
 0x7a9   : > { %1607 = vst.msk [vmem:[%s689_s26] sm:$0xf] %vm694_vm1, %v1606_v31 }
 0x7aa PF: > { %s32_s27 = sadd.s32 1, %s2153_s27  }
 0x7ab   : > { %p29_p7 = scmp.ge.s32.totalorder %s32_s27, 4  }
 0x7ad   :  { %31 = sbr.rel (!%p29_p7) target bundleno = 11 (0xb), region = 154 }
 0x7b2   :  { %1627 = vsyncpa [#allocation3], 1 }
 0x7b3   :  { %1629 = vsyncpa [#allocation3 + $0x1], 1 }
 0x7b4   :  { %1630 = vsyncpa [#allocation5], 1 }
 0x7b5   :  { %1631 = vsyncpa [#allocation8], 1 }
 0x7b6   :  { %1632 = vsyncpa [#allocation11], 1 }

</bundles_post_ra>
